<compile_context>
chip_gen: v6e
topology: v6e:2x2x1
jax: 0.10.0
libtpu: 0.0.40
codegen_flags: <defaults>
</compile_context>

<pallas_src>
import numpy as np
import jax
import jax.numpy as jnp
from jax.experimental import pallas as pl
from jax.experimental.pallas import tpu as pltpu


# Geometry for a 32x32 input:
#   conv1 (k=8,s=4): 32 -> 7    conv2 (k=3,s=2): 7 -> 3    conv3 (k=3,s=2): 3 -> 1
IMG = 32
K1, ST1 = 8, 4
OH1, OH2, OH3 = 7, 3, 1
N1, N2 = OH1 * OH1, OH2 * OH2          # 49, 9


# ----------------------------------------------------------------------------
# Fused per-sample kernel: conv1/2/3 (+folded BN, relu) + linear + sigmoid
# ----------------------------------------------------------------------------
def _make_kernel(c, output_dim):
    def kernel(p1_ref, s2_ref, s3_ref, w1_ref, w2_ref, w3_ref, wl_ref, sh_ref, o_ref):
        f32 = jnp.float32

        # conv1 (+folded-BN shift, relu): ONE im2col dot; patches built on host.
        h1 = jnp.dot(p1_ref[...], w1_ref[...], preferred_element_type=f32)      # (49, c)
        h1 = jnp.maximum(h1 + sh_ref[0:1, 0:c], 0.0)

        # conv2 (+BN, relu): 9 static taps; each = 0/1 row-gather dot @ tap weight.
        acc2 = None
        for t in range(9):
            rows = jnp.dot(s2_ref[t].astype(f32), h1, preferred_element_type=f32)   # (9, c)
            term = jnp.dot(rows, w2_ref[t], preferred_element_type=f32)             # (9, 2c)
            acc2 = term if acc2 is None else acc2 + term
        h2 = jnp.maximum(acc2 + sh_ref[1:2, 0:2 * c], 0.0)                           # (9, 2c)

        # conv3 (+BN, relu): spatial output is 1x1, tap t reads row t of h2.
        acc3 = None
        for t in range(9):
            row = jnp.dot(s3_ref[t].astype(f32), h2, preferred_element_type=f32)    # (1, 2c)
            term = jnp.dot(row, w3_ref[t], preferred_element_type=f32)              # (1, 4c)
            acc3 = term if acc3 is None else acc3 + term
        h3 = jnp.maximum(acc3 + sh_ref[2:3, 0:4 * c], 0.0)                           # (1, 4c)

        # torch.max over W then H is identity (1x1 spatial); Dropout(0.25) is
        # identity at inference.
        z = jnp.dot(h3, wl_ref[...], preferred_element_type=f32) + sh_ref[3:4, 0:output_dim]
        o_ref[...] = jax.nn.sigmoid(z)

    return kernel


# ----------------------------------------------------------------------------
# Batch-independent 0/1 tap-selection constants (tiny; exact in bfloat16)
# ----------------------------------------------------------------------------
def _build_selections():
    # conv2: tap t = i*3+j; output o = oy*3+ox gathers conv1 row (2*oy+i)*7 + (2*ox+j)
    s2 = np.zeros((9, N2, N1), np.float32)
    for i in range(3):
        for j in range(3):
            t = i * 3 + j
            for oy in range(OH2):
                for ox in range(OH2):
                    s2[t, oy * OH2 + ox, (2 * oy + i) * OH1 + (2 * ox + j)] = 1.0
    # conv3: single output position; tap t = i*3+j gathers conv2 row t
    s3 = np.zeros((9, 1, N2), np.float32)
    for t in range(9):
        s3[t, 0, t] = 1.0
    return s2, s3


_S2_NP, _S3_NP = _build_selections()


# ----------------------------------------------------------------------------
# Parameters (deterministic; eval-mode BN scale folded into conv weights)
# ----------------------------------------------------------------------------
def make_params(key, c, output_dim):
    eps = 1e-5
    ks = jax.random.split(key, 4)

    def conv_block(k, kh, cin, cout):
        kk = jax.random.split(k, 6)
        w = jax.random.normal(kk[0], (kh, kh, cin, cout), jnp.float32) * 0.1
        b = jax.random.normal(kk[1], (cout,), jnp.float32) * 0.1
        gamma = 1.0 + 0.1 * jax.random.normal(kk[2], (cout,), jnp.float32)
        beta = 0.1 * jax.random.normal(kk[3], (cout,), jnp.float32)
        mean = 0.1 * jax.random.normal(kk[4], (cout,), jnp.float32)
        var = 0.5 + jax.random.uniform(kk[5], (cout,), jnp.float32)
        scale = gamma / jnp.sqrt(var + eps)
        # Fold BN scale into the conv weights: (p @ W) * scale == p @ (W * scale)
        return {"w": w * scale, "shift": ((b - mean) * scale + beta).reshape(1, cout)}

    def linear(k, din, dout):
        kk = jax.random.split(k, 2)
        w = jax.random.normal(kk[0], (din, dout), jnp.float32) / jnp.sqrt(din)
        b = 0.1 * jax.random.normal(kk[1], (1, dout), jnp.float32)
        return {"w": w, "b": b}

    return {
        "conv1": conv_block(ks[0], 8, 1, c),
        "conv2": conv_block(ks[1], 3, c, 2 * c),
        "conv3": conv_block(ks[2], 3, 2 * c, 4 * c),
        "lin1": linear(ks[3], 4 * c, output_dim),
    }


# ----------------------------------------------------------------------------
# Host-side im2col helper (conv1 patch prep AND the pure-jnp reference)
# ----------------------------------------------------------------------------
def _im2col(x, kh, kw, stride):
    B, H, W, Cin = x.shape
    oh = (H - kh) // stride + 1
    ow = (W - kw) // stride + 1
    cols = []
    for i in range(kh):
        for j in range(kw):
            cols.append(x[:, i:i + stride * oh:stride, j:j + stride * ow:stride, :])
    p = jnp.stack(cols, axis=3)                       # (B, oh, ow, kh*kw, Cin)
    return p.reshape(B * oh * ow, kh * kw * Cin), oh, ow


# ----------------------------------------------------------------------------
# Fused forward: single pallas_call, grid over batch ("parallel")
# ----------------------------------------------------------------------------
def cnn3_fc1_forward(params, x_nchw, c, output_dim):
    B, cin, H, W = x_nchw.shape
    assert (cin, H, W) == (1, IMG, IMG), "geometry constants assume 1x32x32 inputs"
    assert output_dim <= 4 * c, "packed shift buffer assumes output_dim <= 4c"
    fc = 4 * c

    # --- host-side (XLA) prep: replaces the old O(B^2) S1 gather matrix ------
    x_nhwc = jnp.transpose(x_nchw, (0, 2, 3, 1)).astype(jnp.float32)
    p1, _, _ = _im2col(x_nhwc, K1, K1, ST1)                  # (B*49, 64)
    p1 = p1.reshape(B, N1, K1 * K1)

    # Folded-BN conv weights in im2col layout (tap-major for conv2/conv3).
    w1 = params["conv1"]["w"].reshape(K1 * K1, c)            # (64, c)
    w2 = params["conv2"]["w"].reshape(9, c, 2 * c)
    w3 = params["conv3"]["w"].reshape(9, 2 * c, 4 * c)
    wl = params["lin1"]["w"]                                 # (4c, out)

    # Batch-independent 0/1 selection constants; bf16 storage is exact for 0/1.
    s2 = jnp.asarray(_S2_NP, jnp.bfloat16)                   # (9, 9, 49)
    s3 = jnp.asarray(_S3_NP, jnp.bfloat16)                   # (9, 1, 9)

    # Per-layer BN shifts + linear bias packed into one lane-dense buffer.
    def _row(v):
        v = v.reshape(-1)
        return jnp.pad(v, (0, fc - v.shape[0]))
    shifts = jnp.stack([_row(params["conv1"]["shift"]),
                        _row(params["conv2"]["shift"]),
                        _row(params["conv3"]["shift"]),
                        _row(params["lin1"]["b"])], axis=0)  # (4, 4c)

    out = pl.pallas_call(
        _make_kernel(c, output_dim),
        out_shape=jax.ShapeDtypeStruct((B, 1, output_dim), jnp.float32),
        grid=(B,),
        in_specs=[
            pl.BlockSpec((None, N1, K1 * K1), lambda b: (b, 0, 0)),   # per-sample patches
            pl.BlockSpec((9, N2, N1), lambda b: (0, 0, 0)),           # s2 (stays resident)
            pl.BlockSpec((9, 1, N2), lambda b: (0, 0, 0)),            # s3 (stays resident)
            pl.BlockSpec((K1 * K1, c), lambda b: (0, 0)),             # w1
            pl.BlockSpec((9, c, 2 * c), lambda b: (0, 0, 0)),         # w2
            pl.BlockSpec((9, 2 * c, 4 * c), lambda b: (0, 0, 0)),     # w3
            pl.BlockSpec((4 * c, output_dim), lambda b: (0, 0)),      # linear weight
            pl.BlockSpec((4, 4 * c), lambda b: (0, 0)),               # packed shifts+bias
        ],
        out_specs=pl.BlockSpec((None, 1, output_dim), lambda b: (b, 0, 0)),
        compiler_params=pltpu.CompilerParams(
            dimension_semantics=("parallel",)),
    )(p1, s2, s3, w1, w2, w3, wl, shifts)
    return out.reshape(B, output_dim)


# ----------------------------------------------------------------------------
# Pure-jnp reference (standard im2col conv path, HIGHEST precision)
# ----------------------------------------------------------------------------
def forward_ref(params, x_nchw, c, output_dim):
    HI = jax.lax.Precision.HIGHEST
    B = x_nchw.shape[0]
    x = jnp.transpose(x_nchw, (0, 2, 3, 1)).astype(jnp.float32)   # NCHW -> NHWC
    for name, (kh, st, cout) in (("conv1", (8, 4, c)),
                                 ("conv2", (3, 2, 2 * c)),
                                 ("conv3", (3, 2, 4 * c))):
        p, oh, ow = _im2col(x, kh, kh, st)
        w = params[name]["w"].reshape(-1, cout)
        y = jnp.maximum(jnp.dot(p, w, precision=HI) + params[name]["shift"], 0.0)
        x = y.reshape(B, oh, ow, cout)
    feat = jnp.max(jnp.max(x, axis=2), axis=1)        # torch.max over W then H
    # Dropout(0.25) is identity at inference.
    return jax.nn.sigmoid(jnp.dot(feat, params["lin1"]["w"], precision=HI)
                          + params["lin1"]["b"])


if __name__ == "__main__":
    # Small shapes consistent with the module: 32x32 input, small c / output_dim.
    B, c, output_dim = 2, 8, 4
    key = jax.random.PRNGKey(0)
    k_x, k_p = jax.random.split(key)
    x = jax.random.normal(k_x, (B, 1, IMG, IMG), jnp.float32)     # NCHW like PyTorch
    params = make_params(k_p, c, output_dim)

    fwd = jax.jit(lambda p, xx: cnn3_fc1_forward(p, xx, c, output_dim))
    out = jax.block_until_ready(fwd(params, x))

    ref = forward_ref(params, x, c, output_dim)
    assert out.shape == (B, output_dim)
    assert bool(jnp.all(jnp.isfinite(out)))
    assert bool(jnp.allclose(out, ref, atol=1e-4, rtol=1e-4)), (out, ref)
    print("KERNEL_OK")
</pallas_src>

<mosaic_0001>
module attributes {stable_mosaic.version = 11 : i64} {
  func.func @kernel(%arg0: i32, %arg1: memref<1x49x64xf32, #tpu.memory_space<vmem>>, %arg2: memref<9x9x49xbf16, #tpu.memory_space<vmem>>, %arg3: memref<9x1x9xbf16, #tpu.memory_space<vmem>>, %arg4: memref<64x8xf32, #tpu.memory_space<vmem>>, %arg5: memref<9x8x16xf32, #tpu.memory_space<vmem>>, %arg6: memref<9x16x32xf32, #tpu.memory_space<vmem>>, %arg7: memref<32x4xf32, #tpu.memory_space<vmem>>, %arg8: memref<4x32xf32, #tpu.memory_space<vmem>>, %arg9: memref<1x1x4xf32, #tpu.memory_space<vmem>>) attributes {dimension_semantics = [#tpu.dimension_semantics<parallel>], iteration_bounds = array<i64: 2>, scalar_prefetch = 0 : i64, scratch_operands = 0 : i64, tpu.core_type = #tpu.core_type<tc>, window_params = [{transform_indices = @transform_0, window_bounds = array<i64: 1, 49, 64>}, {pipeline_mode = #tpu.pipeline_mode<synchronous>, transform_indices = @transform_1, window_bounds = array<i64: 9, 9, 49>}, {pipeline_mode = #tpu.pipeline_mode<synchronous>, transform_indices = @transform_2, window_bounds = array<i64: 9, 1, 9>}, {pipeline_mode = #tpu.pipeline_mode<synchronous>, transform_indices = @transform_3, window_bounds = array<i64: 64, 8>}, {pipeline_mode = #tpu.pipeline_mode<synchronous>, transform_indices = @transform_4, window_bounds = array<i64: 9, 8, 16>}, {pipeline_mode = #tpu.pipeline_mode<synchronous>, transform_indices = @transform_5, window_bounds = array<i64: 9, 16, 32>}, {pipeline_mode = #tpu.pipeline_mode<synchronous>, transform_indices = @transform_6, window_bounds = array<i64: 32, 4>}, {pipeline_mode = #tpu.pipeline_mode<synchronous>, transform_indices = @transform_7, window_bounds = array<i64: 4, 32>}, {transform_indices = @transform_8, window_bounds = array<i64: 1, 1, 4>}]} {
    %c0 = arith.constant 0 : index
    %c0_0 = arith.constant 0 : index
    %c0_1 = arith.constant 0 : index
    %0 = vector.load %arg1[%c0, %c0_0, %c0_1] : memref<1x49x64xf32, #tpu.memory_space<vmem>>, vector<1x49x64xf32>
    %1 = vector.shape_cast %0 : vector<1x49x64xf32> to vector<49x64xf32>
    %c0_2 = arith.constant 0 : index
    %c0_3 = arith.constant 0 : index
    %2 = vector.load %arg4[%c0_2, %c0_3] : memref<64x8xf32, #tpu.memory_space<vmem>>, vector<64x8xf32>
    %cst = arith.constant dense<0.000000e+00> : vector<49x8xf32>
    %3 = tpu.matmul %1, %2, %cst {dimension_numbers = #tpu.dot_dimension_numbers<[1], [0], [0], [1], [0, 0, 1, 1], [], []>} : vector<49x64xf32>, vector<64x8xf32>, vector<49x8xf32> -> vector<49x8xf32>
    %c0_4 = arith.constant 0 : index
    %c0_5 = arith.constant 0 : index
    %4 = vector.load %arg8[%c0_4, %c0_5] : memref<4x32xf32, #tpu.memory_space<vmem>>, vector<1x8xf32>
    %5 = vector.broadcast %4 : vector<1x8xf32> to vector<49x8xf32>
    %6 = arith.addf %3, %5 : vector<49x8xf32>
    %cst_6 = arith.constant 0.000000e+00 : f32
    %7 = vector.broadcast %cst_6 : f32 to vector<49x8xf32>
    %8 = arith.maximumf %6, %7 : vector<49x8xf32>
    %c0_7 = arith.constant 0 : index
    %c0_8 = arith.constant 0 : index
    %c0_9 = arith.constant 0 : index
    %9 = vector.load %arg2[%c0_7, %c0_8, %c0_9] : memref<9x9x49xbf16, #tpu.memory_space<vmem>>, vector<1x9x49xbf16>
    %10 = vector.shape_cast %9 : vector<1x9x49xbf16> to vector<9x49xbf16>
    %11 = arith.extf %10 : vector<9x49xbf16> to vector<9x49xf32>
    %cst_10 = arith.constant dense<0.000000e+00> : vector<9x8xf32>
    %12 = tpu.matmul %11, %8, %cst_10 {dimension_numbers = #tpu.dot_dimension_numbers<[1], [0], [0], [1], [0, 0, 1, 1], [], []>} : vector<9x49xf32>, vector<49x8xf32>, vector<9x8xf32> -> vector<9x8xf32>
    %c0_11 = arith.constant 0 : index
    %c0_12 = arith.constant 0 : index
    %c0_13 = arith.constant 0 : index
    %13 = vector.load %arg5[%c0_11, %c0_12, %c0_13] : memref<9x8x16xf32, #tpu.memory_space<vmem>>, vector<1x8x16xf32>
    %14 = vector.shape_cast %13 : vector<1x8x16xf32> to vector<8x16xf32>
    %cst_14 = arith.constant dense<0.000000e+00> : vector<9x16xf32>
    %15 = tpu.matmul %12, %14, %cst_14 {dimension_numbers = #tpu.dot_dimension_numbers<[1], [0], [0], [1], [0, 0, 1, 1], [], []>} : vector<9x8xf32>, vector<8x16xf32>, vector<9x16xf32> -> vector<9x16xf32>
    %c1 = arith.constant 1 : index
    %c0_15 = arith.constant 0 : index
    %c0_16 = arith.constant 0 : index
    %16 = vector.load %arg2[%c1, %c0_15, %c0_16] : memref<9x9x49xbf16, #tpu.memory_space<vmem>>, vector<1x9x49xbf16>
    %17 = vector.shape_cast %16 : vector<1x9x49xbf16> to vector<9x49xbf16>
    %18 = arith.extf %17 : vector<9x49xbf16> to vector<9x49xf32>
    %cst_17 = arith.constant dense<0.000000e+00> : vector<9x8xf32>
    %19 = tpu.matmul %18, %8, %cst_17 {dimension_numbers = #tpu.dot_dimension_numbers<[1], [0], [0], [1], [0, 0, 1, 1], [], []>} : vector<9x49xf32>, vector<49x8xf32>, vector<9x8xf32> -> vector<9x8xf32>
    %c1_18 = arith.constant 1 : index
    %c0_19 = arith.constant 0 : index
    %c0_20 = arith.constant 0 : index
    %20 = vector.load %arg5[%c1_18, %c0_19, %c0_20] : memref<9x8x16xf32, #tpu.memory_space<vmem>>, vector<1x8x16xf32>
    %21 = vector.shape_cast %20 : vector<1x8x16xf32> to vector<8x16xf32>
    %cst_21 = arith.constant dense<0.000000e+00> : vector<9x16xf32>
    %22 = tpu.matmul %19, %21, %cst_21 {dimension_numbers = #tpu.dot_dimension_numbers<[1], [0], [0], [1], [0, 0, 1, 1], [], []>} : vector<9x8xf32>, vector<8x16xf32>, vector<9x16xf32> -> vector<9x16xf32>
    %23 = arith.addf %15, %22 : vector<9x16xf32>
    %c2 = arith.constant 2 : index
    %c0_22 = arith.constant 0 : index
    %c0_23 = arith.constant 0 : index
    %24 = vector.load %arg2[%c2, %c0_22, %c0_23] : memref<9x9x49xbf16, #tpu.memory_space<vmem>>, vector<1x9x49xbf16>
    %25 = vector.shape_cast %24 : vector<1x9x49xbf16> to vector<9x49xbf16>
    %26 = arith.extf %25 : vector<9x49xbf16> to vector<9x49xf32>
    %cst_24 = arith.constant dense<0.000000e+00> : vector<9x8xf32>
    %27 = tpu.matmul %26, %8, %cst_24 {dimension_numbers = #tpu.dot_dimension_numbers<[1], [0], [0], [1], [0, 0, 1, 1], [], []>} : vector<9x49xf32>, vector<49x8xf32>, vector<9x8xf32> -> vector<9x8xf32>
    %c2_25 = arith.constant 2 : index
    %c0_26 = arith.constant 0 : index
    %c0_27 = arith.constant 0 : index
    %28 = vector.load %arg5[%c2_25, %c0_26, %c0_27] : memref<9x8x16xf32, #tpu.memory_space<vmem>>, vector<1x8x16xf32>
    %29 = vector.shape_cast %28 : vector<1x8x16xf32> to vector<8x16xf32>
    %cst_28 = arith.constant dense<0.000000e+00> : vector<9x16xf32>
    %30 = tpu.matmul %27, %29, %cst_28 {dimension_numbers = #tpu.dot_dimension_numbers<[1], [0], [0], [1], [0, 0, 1, 1], [], []>} : vector<9x8xf32>, vector<8x16xf32>, vector<9x16xf32> -> vector<9x16xf32>
    %31 = arith.addf %23, %30 : vector<9x16xf32>
    %c3 = arith.constant 3 : index
    %c0_29 = arith.constant 0 : index
    %c0_30 = arith.constant 0 : index
    %32 = vector.load %arg2[%c3, %c0_29, %c0_30] : memref<9x9x49xbf16, #tpu.memory_space<vmem>>, vector<1x9x49xbf16>
    %33 = vector.shape_cast %32 : vector<1x9x49xbf16> to vector<9x49xbf16>
    %34 = arith.extf %33 : vector<9x49xbf16> to vector<9x49xf32>
    %cst_31 = arith.constant dense<0.000000e+00> : vector<9x8xf32>
    %35 = tpu.matmul %34, %8, %cst_31 {dimension_numbers = #tpu.dot_dimension_numbers<[1], [0], [0], [1], [0, 0, 1, 1], [], []>} : vector<9x49xf32>, vector<49x8xf32>, vector<9x8xf32> -> vector<9x8xf32>
    %c3_32 = arith.constant 3 : index
    %c0_33 = arith.constant 0 : index
    %c0_34 = arith.constant 0 : index
    %36 = vector.load %arg5[%c3_32, %c0_33, %c0_34] : memref<9x8x16xf32, #tpu.memory_space<vmem>>, vector<1x8x16xf32>
    %37 = vector.shape_cast %36 : vector<1x8x16xf32> to vector<8x16xf32>
    %cst_35 = arith.constant dense<0.000000e+00> : vector<9x16xf32>
    %38 = tpu.matmul %35, %37, %cst_35 {dimension_numbers = #tpu.dot_dimension_numbers<[1], [0], [0], [1], [0, 0, 1, 1], [], []>} : vector<9x8xf32>, vector<8x16xf32>, vector<9x16xf32> -> vector<9x16xf32>
    %39 = arith.addf %31, %38 : vector<9x16xf32>
    %c4 = arith.constant 4 : index
    %c0_36 = arith.constant 0 : index
    %c0_37 = arith.constant 0 : index
    %40 = vector.load %arg2[%c4, %c0_36, %c0_37] : memref<9x9x49xbf16, #tpu.memory_space<vmem>>, vector<1x9x49xbf16>
    %41 = vector.shape_cast %40 : vector<1x9x49xbf16> to vector<9x49xbf16>
    %42 = arith.extf %41 : vector<9x49xbf16> to vector<9x49xf32>
    %cst_38 = arith.constant dense<0.000000e+00> : vector<9x8xf32>
    %43 = tpu.matmul %42, %8, %cst_38 {dimension_numbers = #tpu.dot_dimension_numbers<[1], [0], [0], [1], [0, 0, 1, 1], [], []>} : vector<9x49xf32>, vector<49x8xf32>, vector<9x8xf32> -> vector<9x8xf32>
    %c4_39 = arith.constant 4 : index
    %c0_40 = arith.constant 0 : index
    %c0_41 = arith.constant 0 : index
    %44 = vector.load %arg5[%c4_39, %c0_40, %c0_41] : memref<9x8x16xf32, #tpu.memory_space<vmem>>, vector<1x8x16xf32>
    %45 = vector.shape_cast %44 : vector<1x8x16xf32> to vector<8x16xf32>
    %cst_42 = arith.constant dense<0.000000e+00> : vector<9x16xf32>
    %46 = tpu.matmul %43, %45, %cst_42 {dimension_numbers = #tpu.dot_dimension_numbers<[1], [0], [0], [1], [0, 0, 1, 1], [], []>} : vector<9x8xf32>, vector<8x16xf32>, vector<9x16xf32> -> vector<9x16xf32>
    %47 = arith.addf %39, %46 : vector<9x16xf32>
    %c5 = arith.constant 5 : index
    %c0_43 = arith.constant 0 : index
    %c0_44 = arith.constant 0 : index
    %48 = vector.load %arg2[%c5, %c0_43, %c0_44] : memref<9x9x49xbf16, #tpu.memory_space<vmem>>, vector<1x9x49xbf16>
    %49 = vector.shape_cast %48 : vector<1x9x49xbf16> to vector<9x49xbf16>
    %50 = arith.extf %49 : vector<9x49xbf16> to vector<9x49xf32>
    %cst_45 = arith.constant dense<0.000000e+00> : vector<9x8xf32>
    %51 = tpu.matmul %50, %8, %cst_45 {dimension_numbers = #tpu.dot_dimension_numbers<[1], [0], [0], [1], [0, 0, 1, 1], [], []>} : vector<9x49xf32>, vector<49x8xf32>, vector<9x8xf32> -> vector<9x8xf32>
    %c5_46 = arith.constant 5 : index
    %c0_47 = arith.constant 0 : index
    %c0_48 = arith.constant 0 : index
    %52 = vector.load %arg5[%c5_46, %c0_47, %c0_48] : memref<9x8x16xf32, #tpu.memory_space<vmem>>, vector<1x8x16xf32>
    %53 = vector.shape_cast %52 : vector<1x8x16xf32> to vector<8x16xf32>
    %cst_49 = arith.constant dense<0.000000e+00> : vector<9x16xf32>
    %54 = tpu.matmul %51, %53, %cst_49 {dimension_numbers = #tpu.dot_dimension_numbers<[1], [0], [0], [1], [0, 0, 1, 1], [], []>} : vector<9x8xf32>, vector<8x16xf32>, vector<9x16xf32> -> vector<9x16xf32>
    %55 = arith.addf %47, %54 : vector<9x16xf32>
    %c6 = arith.constant 6 : index
    %c0_50 = arith.constant 0 : index
    %c0_51 = arith.constant 0 : index
    %56 = vector.load %arg2[%c6, %c0_50, %c0_51] : memref<9x9x49xbf16, #tpu.memory_space<vmem>>, vector<1x9x49xbf16>
    %57 = vector.shape_cast %56 : vector<1x9x49xbf16> to vector<9x49xbf16>
    %58 = arith.extf %57 : vector<9x49xbf16> to vector<9x49xf32>
    %cst_52 = arith.constant dense<0.000000e+00> : vector<9x8xf32>
    %59 = tpu.matmul %58, %8, %cst_52 {dimension_numbers = #tpu.dot_dimension_numbers<[1], [0], [0], [1], [0, 0, 1, 1], [], []>} : vector<9x49xf32>, vector<49x8xf32>, vector<9x8xf32> -> vector<9x8xf32>
    %c6_53 = arith.constant 6 : index
    %c0_54 = arith.constant 0 : index
    %c0_55 = arith.constant 0 : index
    %60 = vector.load %arg5[%c6_53, %c0_54, %c0_55] : memref<9x8x16xf32, #tpu.memory_space<vmem>>, vector<1x8x16xf32>
    %61 = vector.shape_cast %60 : vector<1x8x16xf32> to vector<8x16xf32>
    %cst_56 = arith.constant dense<0.000000e+00> : vector<9x16xf32>
    %62 = tpu.matmul %59, %61, %cst_56 {dimension_numbers = #tpu.dot_dimension_numbers<[1], [0], [0], [1], [0, 0, 1, 1], [], []>} : vector<9x8xf32>, vector<8x16xf32>, vector<9x16xf32> -> vector<9x16xf32>
    %63 = arith.addf %55, %62 : vector<9x16xf32>
    %c7 = arith.constant 7 : index
    %c0_57 = arith.constant 0 : index
    %c0_58 = arith.constant 0 : index
    %64 = vector.load %arg2[%c7, %c0_57, %c0_58] : memref<9x9x49xbf16, #tpu.memory_space<vmem>>, vector<1x9x49xbf16>
    %65 = vector.shape_cast %64 : vector<1x9x49xbf16> to vector<9x49xbf16>
    %66 = arith.extf %65 : vector<9x49xbf16> to vector<9x49xf32>
    %cst_59 = arith.constant dense<0.000000e+00> : vector<9x8xf32>
    %67 = tpu.matmul %66, %8, %cst_59 {dimension_numbers = #tpu.dot_dimension_numbers<[1], [0], [0], [1], [0, 0, 1, 1], [], []>} : vector<9x49xf32>, vector<49x8xf32>, vector<9x8xf32> -> vector<9x8xf32>
    %c7_60 = arith.constant 7 : index
    %c0_61 = arith.constant 0 : index
    %c0_62 = arith.constant 0 : index
    %68 = vector.load %arg5[%c7_60, %c0_61, %c0_62] : memref<9x8x16xf32, #tpu.memory_space<vmem>>, vector<1x8x16xf32>
    %69 = vector.shape_cast %68 : vector<1x8x16xf32> to vector<8x16xf32>
    %cst_63 = arith.constant dense<0.000000e+00> : vector<9x16xf32>
    %70 = tpu.matmul %67, %69, %cst_63 {dimension_numbers = #tpu.dot_dimension_numbers<[1], [0], [0], [1], [0, 0, 1, 1], [], []>} : vector<9x8xf32>, vector<8x16xf32>, vector<9x16xf32> -> vector<9x16xf32>
    %71 = arith.addf %63, %70 : vector<9x16xf32>
    %c8 = arith.constant 8 : index
    %c0_64 = arith.constant 0 : index
    %c0_65 = arith.constant 0 : index
    %72 = vector.load %arg2[%c8, %c0_64, %c0_65] : memref<9x9x49xbf16, #tpu.memory_space<vmem>>, vector<1x9x49xbf16>
    %73 = vector.shape_cast %72 : vector<1x9x49xbf16> to vector<9x49xbf16>
    %74 = arith.extf %73 : vector<9x49xbf16> to vector<9x49xf32>
    %cst_66 = arith.constant dense<0.000000e+00> : vector<9x8xf32>
    %75 = tpu.matmul %74, %8, %cst_66 {dimension_numbers = #tpu.dot_dimension_numbers<[1], [0], [0], [1], [0, 0, 1, 1], [], []>} : vector<9x49xf32>, vector<49x8xf32>, vector<9x8xf32> -> vector<9x8xf32>
    %c8_67 = arith.constant 8 : index
    %c0_68 = arith.constant 0 : index
    %c0_69 = arith.constant 0 : index
    %76 = vector.load %arg5[%c8_67, %c0_68, %c0_69] : memref<9x8x16xf32, #tpu.memory_space<vmem>>, vector<1x8x16xf32>
    %77 = vector.shape_cast %76 : vector<1x8x16xf32> to vector<8x16xf32>
    %cst_70 = arith.constant dense<0.000000e+00> : vector<9x16xf32>
    %78 = tpu.matmul %75, %77, %cst_70 {dimension_numbers = #tpu.dot_dimension_numbers<[1], [0], [0], [1], [0, 0, 1, 1], [], []>} : vector<9x8xf32>, vector<8x16xf32>, vector<9x16xf32> -> vector<9x16xf32>
    %79 = arith.addf %71, %78 : vector<9x16xf32>
    %c1_71 = arith.constant 1 : index
    %c0_72 = arith.constant 0 : index
    %80 = vector.load %arg8[%c1_71, %c0_72] : memref<4x32xf32, #tpu.memory_space<vmem>>, vector<1x16xf32>
    %81 = vector.broadcast %80 : vector<1x16xf32> to vector<9x16xf32>
    %82 = arith.addf %79, %81 : vector<9x16xf32>
    %cst_73 = arith.constant 0.000000e+00 : f32
    %83 = vector.broadcast %cst_73 : f32 to vector<9x16xf32>
    %84 = arith.maximumf %82, %83 : vector<9x16xf32>
    %c0_74 = arith.constant 0 : index
    %c0_75 = arith.constant 0 : index
    %c0_76 = arith.constant 0 : index
    %85 = vector.load %arg3[%c0_74, %c0_75, %c0_76] : memref<9x1x9xbf16, #tpu.memory_space<vmem>>, vector<1x1x9xbf16>
    %86 = vector.shape_cast %85 : vector<1x1x9xbf16> to vector<1x9xbf16>
    %87 = arith.extf %86 : vector<1x9xbf16> to vector<1x9xf32>
    %cst_77 = arith.constant dense<0.000000e+00> : vector<1x16xf32>
    %88 = tpu.matmul %87, %84, %cst_77 {dimension_numbers = #tpu.dot_dimension_numbers<[1], [0], [0], [1], [0, 0, 1, 1], [], []>} : vector<1x9xf32>, vector<9x16xf32>, vector<1x16xf32> -> vector<1x16xf32>
    %c0_78 = arith.constant 0 : index
    %c0_79 = arith.constant 0 : index
    %c0_80 = arith.constant 0 : index
    %89 = vector.load %arg6[%c0_78, %c0_79, %c0_80] : memref<9x16x32xf32, #tpu.memory_space<vmem>>, vector<1x16x32xf32>
    %90 = vector.shape_cast %89 : vector<1x16x32xf32> to vector<16x32xf32>
    %cst_81 = arith.constant dense<0.000000e+00> : vector<1x32xf32>
    %91 = tpu.matmul %88, %90, %cst_81 {dimension_numbers = #tpu.dot_dimension_numbers<[1], [0], [0], [1], [0, 0, 1, 1], [], []>} : vector<1x16xf32>, vector<16x32xf32>, vector<1x32xf32> -> vector<1x32xf32>
    %c1_82 = arith.constant 1 : index
    %c0_83 = arith.constant 0 : index
    %c0_84 = arith.constant 0 : index
    %92 = vector.load %arg3[%c1_82, %c0_83, %c0_84] : memref<9x1x9xbf16, #tpu.memory_space<vmem>>, vector<1x1x9xbf16>
    %93 = vector.shape_cast %92 : vector<1x1x9xbf16> to vector<1x9xbf16>
    %94 = arith.extf %93 : vector<1x9xbf16> to vector<1x9xf32>
    %cst_85 = arith.constant dense<0.000000e+00> : vector<1x16xf32>
    %95 = tpu.matmul %94, %84, %cst_85 {dimension_numbers = #tpu.dot_dimension_numbers<[1], [0], [0], [1], [0, 0, 1, 1], [], []>} : vector<1x9xf32>, vector<9x16xf32>, vector<1x16xf32> -> vector<1x16xf32>
    %c1_86 = arith.constant 1 : index
    %c0_87 = arith.constant 0 : index
    %c0_88 = arith.constant 0 : index
    %96 = vector.load %arg6[%c1_86, %c0_87, %c0_88] : memref<9x16x32xf32, #tpu.memory_space<vmem>>, vector<1x16x32xf32>
    %97 = vector.shape_cast %96 : vector<1x16x32xf32> to vector<16x32xf32>
    %cst_89 = arith.constant dense<0.000000e+00> : vector<1x32xf32>
    %98 = tpu.matmul %95, %97, %cst_89 {dimension_numbers = #tpu.dot_dimension_numbers<[1], [0], [0], [1], [0, 0, 1, 1], [], []>} : vector<1x16xf32>, vector<16x32xf32>, vector<1x32xf32> -> vector<1x32xf32>
    %99 = arith.addf %91, %98 : vector<1x32xf32>
    %c2_90 = arith.constant 2 : index
    %c0_91 = arith.constant 0 : index
    %c0_92 = arith.constant 0 : index
    %100 = vector.load %arg3[%c2_90, %c0_91, %c0_92] : memref<9x1x9xbf16, #tpu.memory_space<vmem>>, vector<1x1x9xbf16>
    %101 = vector.shape_cast %100 : vector<1x1x9xbf16> to vector<1x9xbf16>
    %102 = arith.extf %101 : vector<1x9xbf16> to vector<1x9xf32>
    %cst_93 = arith.constant dense<0.000000e+00> : vector<1x16xf32>
    %103 = tpu.matmul %102, %84, %cst_93 {dimension_numbers = #tpu.dot_dimension_numbers<[1], [0], [0], [1], [0, 0, 1, 1], [], []>} : vector<1x9xf32>, vector<9x16xf32>, vector<1x16xf32> -> vector<1x16xf32>
    %c2_94 = arith.constant 2 : index
    %c0_95 = arith.constant 0 : index
    %c0_96 = arith.constant 0 : index
    %104 = vector.load %arg6[%c2_94, %c0_95, %c0_96] : memref<9x16x32xf32, #tpu.memory_space<vmem>>, vector<1x16x32xf32>
    %105 = vector.shape_cast %104 : vector<1x16x32xf32> to vector<16x32xf32>
    %cst_97 = arith.constant dense<0.000000e+00> : vector<1x32xf32>
    %106 = tpu.matmul %103, %105, %cst_97 {dimension_numbers = #tpu.dot_dimension_numbers<[1], [0], [0], [1], [0, 0, 1, 1], [], []>} : vector<1x16xf32>, vector<16x32xf32>, vector<1x32xf32> -> vector<1x32xf32>
    %107 = arith.addf %99, %106 : vector<1x32xf32>
    %c3_98 = arith.constant 3 : index
    %c0_99 = arith.constant 0 : index
    %c0_100 = arith.constant 0 : index
    %108 = vector.load %arg3[%c3_98, %c0_99, %c0_100] : memref<9x1x9xbf16, #tpu.memory_space<vmem>>, vector<1x1x9xbf16>
    %109 = vector.shape_cast %108 : vector<1x1x9xbf16> to vector<1x9xbf16>
    %110 = arith.extf %109 : vector<1x9xbf16> to vector<1x9xf32>
    %cst_101 = arith.constant dense<0.000000e+00> : vector<1x16xf32>
    %111 = tpu.matmul %110, %84, %cst_101 {dimension_numbers = #tpu.dot_dimension_numbers<[1], [0], [0], [1], [0, 0, 1, 1], [], []>} : vector<1x9xf32>, vector<9x16xf32>, vector<1x16xf32> -> vector<1x16xf32>
    %c3_102 = arith.constant 3 : index
    %c0_103 = arith.constant 0 : index
    %c0_104 = arith.constant 0 : index
    %112 = vector.load %arg6[%c3_102, %c0_103, %c0_104] : memref<9x16x32xf32, #tpu.memory_space<vmem>>, vector<1x16x32xf32>
    %113 = vector.shape_cast %112 : vector<1x16x32xf32> to vector<16x32xf32>
    %cst_105 = arith.constant dense<0.000000e+00> : vector<1x32xf32>
    %114 = tpu.matmul %111, %113, %cst_105 {dimension_numbers = #tpu.dot_dimension_numbers<[1], [0], [0], [1], [0, 0, 1, 1], [], []>} : vector<1x16xf32>, vector<16x32xf32>, vector<1x32xf32> -> vector<1x32xf32>
    %115 = arith.addf %107, %114 : vector<1x32xf32>
    %c4_106 = arith.constant 4 : index
    %c0_107 = arith.constant 0 : index
    %c0_108 = arith.constant 0 : index
    %116 = vector.load %arg3[%c4_106, %c0_107, %c0_108] : memref<9x1x9xbf16, #tpu.memory_space<vmem>>, vector<1x1x9xbf16>
    %117 = vector.shape_cast %116 : vector<1x1x9xbf16> to vector<1x9xbf16>
    %118 = arith.extf %117 : vector<1x9xbf16> to vector<1x9xf32>
    %cst_109 = arith.constant dense<0.000000e+00> : vector<1x16xf32>
    %119 = tpu.matmul %118, %84, %cst_109 {dimension_numbers = #tpu.dot_dimension_numbers<[1], [0], [0], [1], [0, 0, 1, 1], [], []>} : vector<1x9xf32>, vector<9x16xf32>, vector<1x16xf32> -> vector<1x16xf32>
    %c4_110 = arith.constant 4 : index
    %c0_111 = arith.constant 0 : index
    %c0_112 = arith.constant 0 : index
    %120 = vector.load %arg6[%c4_110, %c0_111, %c0_112] : memref<9x16x32xf32, #tpu.memory_space<vmem>>, vector<1x16x32xf32>
    %121 = vector.shape_cast %120 : vector<1x16x32xf32> to vector<16x32xf32>
    %cst_113 = arith.constant dense<0.000000e+00> : vector<1x32xf32>
    %122 = tpu.matmul %119, %121, %cst_113 {dimension_numbers = #tpu.dot_dimension_numbers<[1], [0], [0], [1], [0, 0, 1, 1], [], []>} : vector<1x16xf32>, vector<16x32xf32>, vector<1x32xf32> -> vector<1x32xf32>
    %123 = arith.addf %115, %122 : vector<1x32xf32>
    %c5_114 = arith.constant 5 : index
    %c0_115 = arith.constant 0 : index
    %c0_116 = arith.constant 0 : index
    %124 = vector.load %arg3[%c5_114, %c0_115, %c0_116] : memref<9x1x9xbf16, #tpu.memory_space<vmem>>, vector<1x1x9xbf16>
    %125 = vector.shape_cast %124 : vector<1x1x9xbf16> to vector<1x9xbf16>
    %126 = arith.extf %125 : vector<1x9xbf16> to vector<1x9xf32>
    %cst_117 = arith.constant dense<0.000000e+00> : vector<1x16xf32>
    %127 = tpu.matmul %126, %84, %cst_117 {dimension_numbers = #tpu.dot_dimension_numbers<[1], [0], [0], [1], [0, 0, 1, 1], [], []>} : vector<1x9xf32>, vector<9x16xf32>, vector<1x16xf32> -> vector<1x16xf32>
    %c5_118 = arith.constant 5 : index
    %c0_119 = arith.constant 0 : index
    %c0_120 = arith.constant 0 : index
    %128 = vector.load %arg6[%c5_118, %c0_119, %c0_120] : memref<9x16x32xf32, #tpu.memory_space<vmem>>, vector<1x16x32xf32>
    %129 = vector.shape_cast %128 : vector<1x16x32xf32> to vector<16x32xf32>
    %cst_121 = arith.constant dense<0.000000e+00> : vector<1x32xf32>
    %130 = tpu.matmul %127, %129, %cst_121 {dimension_numbers = #tpu.dot_dimension_numbers<[1], [0], [0], [1], [0, 0, 1, 1], [], []>} : vector<1x16xf32>, vector<16x32xf32>, vector<1x32xf32> -> vector<1x32xf32>
    %131 = arith.addf %123, %130 : vector<1x32xf32>
    %c6_122 = arith.constant 6 : index
    %c0_123 = arith.constant 0 : index
    %c0_124 = arith.constant 0 : index
    %132 = vector.load %arg3[%c6_122, %c0_123, %c0_124] : memref<9x1x9xbf16, #tpu.memory_space<vmem>>, vector<1x1x9xbf16>
    %133 = vector.shape_cast %132 : vector<1x1x9xbf16> to vector<1x9xbf16>
    %134 = arith.extf %133 : vector<1x9xbf16> to vector<1x9xf32>
    %cst_125 = arith.constant dense<0.000000e+00> : vector<1x16xf32>
    %135 = tpu.matmul %134, %84, %cst_125 {dimension_numbers = #tpu.dot_dimension_numbers<[1], [0], [0], [1], [0, 0, 1, 1], [], []>} : vector<1x9xf32>, vector<9x16xf32>, vector<1x16xf32> -> vector<1x16xf32>
    %c6_126 = arith.constant 6 : index
    %c0_127 = arith.constant 0 : index
    %c0_128 = arith.constant 0 : index
    %136 = vector.load %arg6[%c6_126, %c0_127, %c0_128] : memref<9x16x32xf32, #tpu.memory_space<vmem>>, vector<1x16x32xf32>
    %137 = vector.shape_cast %136 : vector<1x16x32xf32> to vector<16x32xf32>
    %cst_129 = arith.constant dense<0.000000e+00> : vector<1x32xf32>
    %138 = tpu.matmul %135, %137, %cst_129 {dimension_numbers = #tpu.dot_dimension_numbers<[1], [0], [0], [1], [0, 0, 1, 1], [], []>} : vector<1x16xf32>, vector<16x32xf32>, vector<1x32xf32> -> vector<1x32xf32>
    %139 = arith.addf %131, %138 : vector<1x32xf32>
    %c7_130 = arith.constant 7 : index
    %c0_131 = arith.constant 0 : index
    %c0_132 = arith.constant 0 : index
    %140 = vector.load %arg3[%c7_130, %c0_131, %c0_132] : memref<9x1x9xbf16, #tpu.memory_space<vmem>>, vector<1x1x9xbf16>
    %141 = vector.shape_cast %140 : vector<1x1x9xbf16> to vector<1x9xbf16>
    %142 = arith.extf %141 : vector<1x9xbf16> to vector<1x9xf32>
    %cst_133 = arith.constant dense<0.000000e+00> : vector<1x16xf32>
    %143 = tpu.matmul %142, %84, %cst_133 {dimension_numbers = #tpu.dot_dimension_numbers<[1], [0], [0], [1], [0, 0, 1, 1], [], []>} : vector<1x9xf32>, vector<9x16xf32>, vector<1x16xf32> -> vector<1x16xf32>
    %c7_134 = arith.constant 7 : index
    %c0_135 = arith.constant 0 : index
    %c0_136 = arith.constant 0 : index
    %144 = vector.load %arg6[%c7_134, %c0_135, %c0_136] : memref<9x16x32xf32, #tpu.memory_space<vmem>>, vector<1x16x32xf32>
    %145 = vector.shape_cast %144 : vector<1x16x32xf32> to vector<16x32xf32>
    %cst_137 = arith.constant dense<0.000000e+00> : vector<1x32xf32>
    %146 = tpu.matmul %143, %145, %cst_137 {dimension_numbers = #tpu.dot_dimension_numbers<[1], [0], [0], [1], [0, 0, 1, 1], [], []>} : vector<1x16xf32>, vector<16x32xf32>, vector<1x32xf32> -> vector<1x32xf32>
    %147 = arith.addf %139, %146 : vector<1x32xf32>
    %c8_138 = arith.constant 8 : index
    %c0_139 = arith.constant 0 : index
    %c0_140 = arith.constant 0 : index
    %148 = vector.load %arg3[%c8_138, %c0_139, %c0_140] : memref<9x1x9xbf16, #tpu.memory_space<vmem>>, vector<1x1x9xbf16>
    %149 = vector.shape_cast %148 : vector<1x1x9xbf16> to vector<1x9xbf16>
    %150 = arith.extf %149 : vector<1x9xbf16> to vector<1x9xf32>
    %cst_141 = arith.constant dense<0.000000e+00> : vector<1x16xf32>
    %151 = tpu.matmul %150, %84, %cst_141 {dimension_numbers = #tpu.dot_dimension_numbers<[1], [0], [0], [1], [0, 0, 1, 1], [], []>} : vector<1x9xf32>, vector<9x16xf32>, vector<1x16xf32> -> vector<1x16xf32>
    %c8_142 = arith.constant 8 : index
    %c0_143 = arith.constant 0 : index
    %c0_144 = arith.constant 0 : index
    %152 = vector.load %arg6[%c8_142, %c0_143, %c0_144] : memref<9x16x32xf32, #tpu.memory_space<vmem>>, vector<1x16x32xf32>
    %153 = vector.shape_cast %152 : vector<1x16x32xf32> to vector<16x32xf32>
    %cst_145 = arith.constant dense<0.000000e+00> : vector<1x32xf32>
    %154 = tpu.matmul %151, %153, %cst_145 {dimension_numbers = #tpu.dot_dimension_numbers<[1], [0], [0], [1], [0, 0, 1, 1], [], []>} : vector<1x16xf32>, vector<16x32xf32>, vector<1x32xf32> -> vector<1x32xf32>
    %155 = arith.addf %147, %154 : vector<1x32xf32>
    %c2_146 = arith.constant 2 : index
    %c0_147 = arith.constant 0 : index
    %156 = vector.load %arg8[%c2_146, %c0_147] : memref<4x32xf32, #tpu.memory_space<vmem>>, vector<1x32xf32>
    %157 = arith.addf %155, %156 : vector<1x32xf32>
    %cst_148 = arith.constant 0.000000e+00 : f32
    %158 = vector.broadcast %cst_148 : f32 to vector<1x32xf32>
    %159 = arith.maximumf %157, %158 : vector<1x32xf32>
    %c0_149 = arith.constant 0 : index
    %c0_150 = arith.constant 0 : index
    %160 = vector.load %arg7[%c0_149, %c0_150] : memref<32x4xf32, #tpu.memory_space<vmem>>, vector<32x4xf32>
    %cst_151 = arith.constant dense<0.000000e+00> : vector<1x4xf32>
    %161 = tpu.matmul %159, %160, %cst_151 {dimension_numbers = #tpu.dot_dimension_numbers<[1], [0], [0], [1], [0, 0, 1, 1], [], []>} : vector<1x32xf32>, vector<32x4xf32>, vector<1x4xf32> -> vector<1x4xf32>
    %c3_152 = arith.constant 3 : index
    %c0_153 = arith.constant 0 : index
    %162 = vector.load %arg8[%c3_152, %c0_153] : memref<4x32xf32, #tpu.memory_space<vmem>>, vector<1x4xf32>
    %163 = arith.addf %161, %162 : vector<1x4xf32>
    %164 = arith.negf %163 : vector<1x4xf32>
    %165 = math.exp %164 : vector<1x4xf32>
    %cst_154 = arith.constant 1.000000e+00 : f32
    %166 = vector.broadcast %cst_154 : f32 to vector<1x4xf32>
    %167 = arith.addf %166, %165 : vector<1x4xf32>
    %168 = arith.divf %166, %167 : vector<1x4xf32>
    %c0_155 = arith.constant 0 : index
    %c0_156 = arith.constant 0 : index
    %c0_157 = arith.constant 0 : index
    %169 = vector.load %arg9[%c0_155, %c0_156, %c0_157] : memref<1x1x4xf32, #tpu.memory_space<vmem>>, vector<1x1x4xf32>
    %170 = vector.shape_cast %169 : vector<1x1x4xf32> to vector<1x4xf32>
    %171 = vector.shape_cast %168 : vector<1x4xf32> to vector<1x1x4xf32>
    tpu.vector_store %arg9[%c0_155, %c0_156, %c0_157], %171 {strides = array<i32>} : memref<1x1x4xf32, #tpu.memory_space<vmem>>, vector<1x1x4xf32>,
    return
  }
  func.func @transform_0(%arg0: i32) -> (i32, i32, i32) {
    %c0_i32 = arith.constant 0 : i32
    %c0_i32_0 = arith.constant 0 : i32
    %c0_i32_1 = arith.constant 0 : i32
    return %arg0, %c0_i32, %c0_i32_0 : i32, i32, i32
  }
  func.func @transform_1(%arg0: i32) -> (i32, i32, i32) {
    %c0_i32 = arith.constant 0 : i32
    %c0_i32_0 = arith.constant 0 : i32
    %c0_i32_1 = arith.constant 0 : i32
    %c0_i32_2 = arith.constant 0 : i32
    return %c0_i32, %c0_i32_0, %c0_i32_1 : i32, i32, i32
  }
  func.func @transform_2(%arg0: i32) -> (i32, i32, i32) {
    %c0_i32 = arith.constant 0 : i32
    %c0_i32_0 = arith.constant 0 : i32
    %c0_i32_1 = arith.constant 0 : i32
    %c0_i32_2 = arith.constant 0 : i32
    return %c0_i32, %c0_i32_0, %c0_i32_1 : i32, i32, i32
  }
  func.func @transform_3(%arg0: i32) -> (i32, i32) {
    %c0_i32 = arith.constant 0 : i32
    %c0_i32_0 = arith.constant 0 : i32
    %c0_i32_1 = arith.constant 0 : i32
    return %c0_i32, %c0_i32_0 : i32, i32
  }
  func.func @transform_4(%arg0: i32) -> (i32, i32, i32) {
    %c0_i32 = arith.constant 0 : i32
    %c0_i32_0 = arith.constant 0 : i32
    %c0_i32_1 = arith.constant 0 : i32
    %c0_i32_2 = arith.constant 0 : i32
    return %c0_i32, %c0_i32_0, %c0_i32_1 : i32, i32, i32
  }
  func.func @transform_5(%arg0: i32) -> (i32, i32, i32) {
    %c0_i32 = arith.constant 0 : i32
    %c0_i32_0 = arith.constant 0 : i32
    %c0_i32_1 = arith.constant 0 : i32
    %c0_i32_2 = arith.constant 0 : i32
    return %c0_i32, %c0_i32_0, %c0_i32_1 : i32, i32, i32
  }
  func.func @transform_6(%arg0: i32) -> (i32, i32) {
    %c0_i32 = arith.constant 0 : i32
    %c0_i32_0 = arith.constant 0 : i32
    %c0_i32_1 = arith.constant 0 : i32
    return %c0_i32, %c0_i32_0 : i32, i32
  }
  func.func @transform_7(%arg0: i32) -> (i32, i32) {
    %c0_i32 = arith.constant 0 : i32
    %c0_i32_0 = arith.constant 0 : i32
    %c0_i32_1 = arith.constant 0 : i32
    return %c0_i32, %c0_i32_0 : i32, i32
  }
  func.func @transform_8(%arg0: i32) -> (i32, i32, i32) {
    %c0_i32 = arith.constant 0 : i32
    %c0_i32_0 = arith.constant 0 : i32
    %c0_i32_1 = arith.constant 0 : i32
    return %arg0, %c0_i32, %c0_i32_0 : i32, i32, i32
  }
}

</mosaic_0001>

<bundles_post_ra>
// kernel: _lambda_.1
= control target key start
LH: loop header
LB: loop body
LE: loop exit
PB: predicated region body
PF: predicated region fallthrough
CT: control target
= control target key end

     0   :  { %13 = vsyncpa [#allocation3], 0  ;;  %s5029_s0 = inlined_call_operand.vmem [shape: f32[2,49,64], index: 0, kind: input, shape index: {}]   ;;  %s5030_s1 = inlined_call_operand.vmem [shape: bf16[9,9,49], index: 1, kind: input, shape index: {}]   ;;  %s5031_s2 = inlined_call_operand.vmem [shape: bf16[9,1,9], index: 2, kind: input, shape index: {}]   ;;  %s5032_s3 = inlined_call_operand.vmem [shape: f32[64,8], index: 3, kind: input, shape index: {}]   ;;  %s5033_s4 = inlined_call_operand.vmem [shape: f32[9,8,16], index: 4, kind: input, shape index: {}]   ;;  %s5034_s5 = inlined_call_operand.vmem [shape: f32[9,16,32], index: 5, kind: input, shape index: {}]   ;;  %s5035_s6 = inlined_call_operand.vmem [shape: f32[32,4], index: 6, kind: input, shape index: {}]   ;;  %s5036_s7 = inlined_call_operand.vmem [shape: f32[4,32], index: 7, kind: input, shape index: {}]   ;;  %s5037_s8 = inlined_call_operand.hbm [shape: f32[2,1,4], index: 8, kind: output, shape index: {}]  }
   0x1   :  { %15 = vsyncpa [#allocation3 + $0x1], 0  ;;  %s4385_s27 = smov 0   ;;  %s4387_s28 = smov 0  }
   0x2   :  { %s4389_s29 = smov 0   ;;  %s4391_s30 = smov 0  }
   0x3 LB: > { %s4406_s9 = sadd.s32 4294967295, %s4335_s30   ;;  %s3536_s10 = sadd.s32 4294967294, %s4335_s30   ;;  %s4335_s30 = sphi %s4391_s30, %s5043_s30   ;;  %s4331_s29 = sphi %s4389_s29, %s5042_s29   ;;  %s4327_s28 = sphi %s4387_s28, %s5041_s28   ;;  %s4323_s27 = sphi %s4385_s27, %s5040_s27  }
   0x4   : > { %s4410_s11 = sadd.s32 1, %s4335_s30   ;;  %s201_s12 = sadd.s32 1, %s4331_s29 }
   0x5   : > { %s198_s13 = ssub.s32 %s4335_s30, %s4410_s11  ;;  %p211_p0 = scmp.ne.s32.totalorder %s4331_s29, %s4327_s28 }
   0x6   : > { %p199_p1 = scmp.eq.s32.totalorder %s198_s13, 0  ;;  %p212_p2 = scmp.eq.s32.totalorder %s4406_s9, 1 }
   0x7   : > { %p217_p3 = scmp.ne.s32.totalorder %s4327_s28, %s4323_s27  ;;  %p218_p4 = scmp.eq.s32.totalorder %s3536_s10, 1 }
   0x8   : > { %s4421_s14 = scalar_select %p199_p1, %s4331_s29, %s201_s12  }
   0x9   : > { %p4423_p5 = por %p212_p2, %p211_p0  ;;  %p4427_p6 = por %p218_p4, %p217_p3 }
   0xa   : > { %p3539_p7 = scmp.ge.s32.totalorder %s4335_s30, 1  ;;  %p265_p8 = scmp.lt.s32.totalorder %s4335_s30, 3 }
   0xc   : > { %p266_p9 = pnand %p3539_p7, %p265_p8 }
   0xd   : > { %p298_p10 = scmp.lt.s32.totalorder (!%p266_p9), %s4406_s9, 1  ;;  %s296_s24 = sand.u32 (!%p266_p9), 1, %s4327_s28  }
   0xe   : > { %269 = sbr.rel (%p266_p9) target bundleno = 2804 (0xaf4), region = 52  ;;  %s3672_s25 = sshll.u32 (!%p266_p9), %s4406_s9, 4 }
   0xf   : > { %s297_s26 = scalar_lea.vmem (!%p266_p9), [#allocation2], %s296_s24  ;;  %s4994_s17 = scalar_lea.hbm (!%p266_p9), %s5037_s8, %s3672_s25 }
  0x10   : > { %s3481_s10 = sshll.u32 (!%p266_p9), %s297_s26, 4  ;;  %s3469_s18 = scalar_lea.sflag (!%p266_p9), [#allocation3], %s296_s24  ;;  %s3482_s10 = int_to_ptr.vmem [resolvable:$true] %s3481_s10 }
  0x11   : > { %s4275_s19 = scalar_lea.vmem (!%p266_p9), %s3482_s10, 16  ;;  %s4339_s20 = smov (!%p266_p9), [#allocation2]  }
  0x12   : > { %p4276_p11 = scmp.ne.s32.totalorder (!%p266_p9), %s3482_s10, %s4275_s19  ;;  %s4279_s21 = sshll.u32 (!%p266_p9), %s4339_s20, 4  ;;  %s4280_s21 = int_to_ptr.vmem [resolvable:$false] %s4279_s21 }
  0x13   : > { %v317_v0 = vld [vmem:[%s5032_s3 + $0x38] sm:$0xff]  ;;  %v4337_v1 = vmov 0.0   ;;  %v316_v2 = vld [vmem:[%s5032_s3 + $0x30] sm:$0xff]  ;;  %vm4338_vm0 = vmmov 0   ;;  %v315_v3 = vld [vmem:[%s5032_s3 + $0x28] sm:$0xff]  ;;  %s299_s23 = scalar_select %p298_p10, %s4406_s9, 1 }
  0x14   : > { %3857 = vmatprep.subr.mxu0 %v4337_v1  ;;  %3873 = vmatprep.mubr.msk.f32.mxu0 %vm4338_vm0, %v4337_v1  ;;  %v314_v4 = vld [vmem:[%s5032_s3 + $0x20] sm:$0xff]  ;;  %v313_v5 = vld [vmem:[%s5032_s3 + $0x18] sm:$0xff]  ;;  %v312_v6 = vld [vmem:[%s5032_s3 + $0x10] sm:$0xff]  ;;  %vm323_vm1 = vcmask 523264   ;;  %vm456_vm2 = vcmask 400384   ;;  %vm463_vm3 = vcmask 1040384   ;;  %p4277_p12 = pnand %p4276_p11, %p4423_p5  ;;  %p4282_p0 = scmp.lt.s32.totalorder %s3482_s10, %s4280_s21 }
  0x15   : > { %3858 = vmatpush3.msra.mxu0 %v317_v0  ;;  %s4229_s12 = smul.u32 56, %s299_s23  ;;  %v311_v7 = vld [vmem:[%s5032_s3 + $0x8] sm:$0xff]  ;;  %v310_v8 = vld [vmem:[%s5032_s3] sm:$0xff]  ;;  %v3563_v48 = vld [vmem:[%s5030_s1 + $0x14] sm:$0x1]  ;;  %vm631_vm4 = vcmask 64512  }
  0x16   : > { %3859 = vmatprep.subr.mxu0 %v4337_v1  ;;  %v452_v16 = vld [vmem:[%s5030_s1] ss:$16 sps:$4 sm:$0xff]   ;;  %v453_v46 = vld [vmem:[%s5030_s1 + $0x4] sm:$0x1]  ;;  %v3575_v51 = vld [vmem:[%s5033_s4 + $0x18] sm:$0xff]  ;;  %v798_v52 = vunpack.c.l.bf16 %v3563_v48  ;;  %vm2002_vm5 = vcmask 72704   ;;  %p4278_p13 = pneg %p4277_p12 }
  0x17   : > { %3860 = vmatpush3.msra.mxu0 %v316_v2  ;;  %s302_s22 = scalar_lea.vmem %s5029_s0, %s4229_s12  ;;  %v454_v17 = vunpack.c.l.bf16 %v452_v16  ;;  %v797_v18 = vunpack.c.h.bf16 %v452_v16  ;;  %v3541_v31 = vld [vmem:[%s5036_s7] ss:$0 sm:$0xff]  ;;  %v455_v50 = vunpack.c.l.bf16 %v453_v46  ;;  %v3552_v53 = vld [vmem:[%s5030_s1 + $0x8] ss:$16 sps:$4 sm:$0xff]   ;;  %v3553_v55 = vld [vmem:[%s5030_s1 + $0xc] sm:$0x1] }
  0x18   : > { %3861 = vmatprep.subr.mxu0 %v4337_v1  ;;  %v303_v9 = vld [vmem:[%s302_s22] sm:$0xff]  ;;  %v304_v10 = vld [vmem:[%s302_s22 + $0x8] sm:$0xff]  ;;  %v305_v11 = vld [vmem:[%s302_s22 + $0x10] sm:$0xff]  ;;  %v546_v54 = vunpack.c.l.bf16 %v3552_v53  ;;  %v547_v56 = vunpack.c.l.bf16 %v3553_v55  ;;  %vm2160_vm6 = vcmask 130048   ;;  %vm3386_vm7 = vcmask 261120   ;;  %s4281_s9 = scalar_lea.vmem %s4280_s21, 32 }
  0x19   : > { %3862 = vmatpush3.msra.mxu0 %v315_v3  ;;  %v306_v12 = vld [vmem:[%s302_s22 + $0x18] sm:$0xff]  ;;  %v307_v13 = vld [vmem:[%s302_s22 + $0x20] sm:$0xff]  ;;  %v308_v14 = vld [vmem:[%s302_s22 + $0x28] sm:$0xff]  ;;  %3908 = vmatprep.mubr.msk.f32.mxu1 %vm456_vm2, %v454_v17  ;;  %v968_v3 = vunpack.c.h.bf16 %v3552_v53  ;;  %vm3466_vm8 = vcmask 24576   ;;  %p4283_p1 = scmp.lt.s32.totalorder %s4281_s9, %s4275_s19 }
  0x1a   : > { %3863 = vmatprep.subr.mxu0 %v4337_v1  ;;  %v309_v15 = vld [vmem:[%s302_s22 + $0x30] sm:$0x1]  ;;  %v3557_v57 = vld [vmem:[%s5033_s4 + $0x8] sm:$0xff]  ;;  %v542_v58 = vld [vmem:[%s5033_s4] sm:$0xff] }
  0x1b   : > { %3864 = vmatpush3.msra.mxu0 %v314_v4  ;;  %v3567_v0 = vld [vmem:[%s5033_s4 + $0x10] sm:$0xff]  ;;  %v3571_v4 = vld [vmem:[%s5030_s1 + $0x1c] sm:$0x1]  ;;  %v3578_v17 = vld [vmem:[%s5030_s1 + $0x20] ss:$8 sps:$4 sm:$0xff]   ;;  %p4284_p2 = por %p4283_p1, %p4282_p0 }
  0x1c   : > { %3865 = vmatprep.subr.mxu0 %v4337_v1  ;;  %v3595_v48 = vld [vmem:[%s5030_s1 + $0x34] sm:$0x1] }
  0x1d   : > { %3866 = vmatpush3.msra.mxu0 %v313_v5  ;;  %v969_v5 = vunpack.c.l.bf16 %v3571_v4  ;;  %p4285_p3 = pnand %p4284_p2, %p4278_p13 }
  0x1e   : > { %3867 = vmatprep.subr.mxu0 %v4337_v1 }
  0x1f   : > { %3868 = vmatpush3.msra.mxu0 %v312_v6  ;;  %v3583_v6 = vld [vmem:[%s5033_s4 + $0x20] sm:$0xff] }
  0x20   : > { %3869 = vmatprep.subr.mxu0 %v4337_v1 }
  0x21   : > { %3870 = vmatpush3.msra.mxu0 %v311_v7 }
  0x22   : > { %3871 = vmatprep.subr.mxu0 %v4337_v1 }
  0x23   : > { %3872 = vmatpush3.msra.mxu0 %v310_v8 }
  0x24   : > { %3874 = vmatmul.mubr.msk.f32.vlgmr.msra.gmra.mxu0 %vm323_vm1, %v303_v9 }
  0x25   : > { %3876 = vmatprep.mubr.msk.f32.mxu0 %vm4338_vm0, %v4337_v1 }
  0x28   : > { %3877 = vmatmul.mubr.msk.f32.gmra.mxu0 %vm323_vm1, %v304_v10 }
  0x29   : > { %3879 = vmatprep.mubr.msk.f32.mxu0 %vm4338_vm0, %v4337_v1 }
  0x2c   : > { %3880 = vmatmul.mubr.msk.f32.gmra.mxu0 %vm323_vm1, %v305_v11 }
  0x2d   : > { %3882 = vmatprep.mubr.msk.f32.mxu0 %vm4338_vm0, %v4337_v1 }
  0x30   : > { %3883 = vmatmul.mubr.msk.f32.gmra.mxu0 %vm323_vm1, %v306_v12 }
  0x31   : > { %3885 = vmatprep.mubr.msk.f32.mxu0 %vm4338_vm0, %v4337_v1 }
  0x34   : > { %3886 = vmatmul.mubr.msk.f32.gmra.mxu0 %vm323_vm1, %v307_v13 }
  0x35   : > { %3888 = vmatprep.mubr.msk.f32.mxu0 %vm4338_vm0, %v4337_v1 }
  0x38   : > { %3889 = vmatmul.mubr.msk.f32.gmra.mxu0 %vm323_vm1, %v308_v14 }
  0x39   : > { %3891 = vmatprep.mubr.msk.f32.mxu0 %vm4338_vm0, %v4337_v1 }
  0x3c   : > { %3892 = vmatmul.mubr.msk.f32.gmra.mxu0 %vm323_vm1, %v309_v15 }
  0x3d   : > { %3952 = vmatprep.mubr.msk.f32.mxu0 %vm456_vm2, %v797_v18 }
  0xe4   : > { %v411_v19 = vpop.f32.mrf.mxu0 }
  0xe5   : > { %v412_v44 = vadd.f32 %v3541_v31, %v411_v19  ;;  %v1139_v19 = vunpack.c.l.bf16 %v3578_v17 }
  0xe6   : > { %v3875_v20 = vpop.f32.mrf.mxu0 }
  0xe7   : > { %v4541_v49 = vmax.f32 %v412_v44, 0.0 }
  0xe8   : > { %v416_v21 = vpop.f32.mrf.mxu0 }
  0xe9   : > { %v417_v42 = vadd.f32 %v3541_v31, %v416_v21  ;;  %v3579_v21 = vld [vmem:[%s5030_s1 + $0x24] sm:$0x1] }
  0xea   : > { %v3878_v22 = vpop.f32.mrf.mxu0 }
  0xeb   : > { %v4532_v47 = vmax.f32 %v417_v42, 0.0  ;;  %v1140_v22 = vunpack.c.l.bf16 %v3579_v21  ;;  %v3625_v21 = vld [vmem:[%s5034_s5 + $0x18] sm:$0xff] }
  0xec   : > { %v421_v23 = vpop.f32.mrf.mxu0 }
  0xed   : > { %v422_v40 = vadd.f32 %v3541_v31, %v421_v23  ;;  %v3591_v23 = vld [vmem:[%s5033_s4 + $0x28] sm:$0xff] }
  0xee   : > { %v3881_v24 = vpop.f32.mrf.mxu0 }
  0xef   : > { %v4523_v45 = vmax.f32 %v422_v40, 0.0  ;;  %v3594_v40 = vld [vmem:[%s5030_s1 + $0x30] ss:$8 sps:$4 sm:$0xff]  }
  0xf0   : > { %v426_v25 = vpop.f32.mrf.mxu0  ;;  %v1481_v44 = vunpack.c.l.bf16 %v3594_v40 }
  0xf1   : > { %v427_v38 = vadd.f32 %v3541_v31, %v426_v25 }
  0xf2   : > { %v3884_v26 = vpop.f32.mrf.mxu0 }
  0xf3   : > { %v4517_v43 = vmax.f32 %v427_v38, 0.0 }
  0xf4   : > { %v431_v27 = vpop.f32.mrf.mxu0 }
  0xf5   : > { %v432_v36 = vadd.f32 %v3541_v31, %v431_v27 }
  0xf6   : > { %v3887_v28 = vpop.f32.mrf.mxu0 }
  0xf7   : > { %v4511_v41 = vmax.f32 %v432_v36, 0.0 }
  0xf8   : > { %v436_v29 = vpop.f32.mrf.mxu0 }
  0xf9   : > { %v437_v33 = vadd.f32 %v3541_v31, %v436_v29  ;;  %v1310_v29 = vunpack.c.h.bf16 %v3578_v17 }
  0xfa   : > { %v3890_v30 = vpop.f32.mrf.mxu0 }
  0xfb   : > { %v4501_v39 = vmax.f32 %v437_v33, 0.0  ;;  %v3599_v33 = vld [vmem:[%s5033_s4 + $0x30] sm:$0xff] }
  0xfc   : > { %v441_v32 = vpop.f32.mrf.mxu0 }
  0xfd   : > { %v442_v34 = vadd.f32 %v3541_v31, %v441_v32  ;;  %v3587_v31 = vld [vmem:[%s5030_s1 + $0x2c] sm:$0x1] }
  0xfe   : > { %v3893_v35 = vpop.f32.mrf.mxu0  ;;  %v1311_v32 = vunpack.c.l.bf16 %v3587_v31 }
  0xff   : > { %v4499_v37 = vmax.f32 %v442_v34, 0.0 }
 0x101   : > { %3894 = vmatprep.subr.msk.mxu1 %vm463_vm3, %v4499_v37  ;;  %3938 = vmatprep.subr.msk.mxu0 %vm463_vm3, %v4499_v37 }
 0x102   : > { %3895 = vmatpush3.msk.msra.mxu1 %vm463_vm3, %v4499_v37  ;;  %3939 = vmatpush3.msk.msra.mxu0 %vm463_vm3, %v4499_v37 }
 0x103   : > { %3896 = vmatprep.subr.mxu1 %v4501_v39  ;;  %3940 = vmatprep.subr.mxu0 %v4501_v39 }
 0x104   : > { %3897 = vmatpush3.msra.mxu1 %v4501_v39  ;;  %3941 = vmatpush3.msra.mxu0 %v4501_v39 }
 0x105   : > { %3898 = vmatprep.subr.mxu1 %v4511_v41  ;;  %3942 = vmatprep.subr.mxu0 %v4511_v41 }
 0x106   : > { %3899 = vmatpush3.msra.mxu1 %v4511_v41  ;;  %3943 = vmatpush3.msra.mxu0 %v4511_v41 }
 0x107   : > { %3900 = vmatprep.subr.mxu1 %v4517_v43  ;;  %3944 = vmatprep.subr.mxu0 %v4517_v43 }
 0x108   : > { %3901 = vmatpush3.msra.mxu1 %v4517_v43  ;;  %3945 = vmatpush3.msra.mxu0 %v4517_v43 }
 0x109   : > { %3902 = vmatprep.subr.mxu1 %v4523_v45  ;;  %3946 = vmatprep.subr.mxu0 %v4523_v45 }
 0x10a   : > { %3903 = vmatpush3.msra.mxu1 %v4523_v45  ;;  %3947 = vmatpush3.msra.mxu0 %v4523_v45 }
 0x10b   : > { %3904 = vmatprep.subr.mxu1 %v4532_v47  ;;  %3948 = vmatprep.subr.mxu0 %v4532_v47 }
 0x10c   : > { %3905 = vmatpush3.msra.mxu1 %v4532_v47  ;;  %3949 = vmatpush3.msra.mxu0 %v4532_v47 }
 0x10d   : > { %3906 = vmatprep.subr.mxu1 %v4541_v49  ;;  %3950 = vmatprep.subr.mxu0 %v4541_v49 }
 0x10e   : > { %3907 = vmatpush3.msra.mxu1 %v4541_v49  ;;  %3951 = vmatpush3.msra.mxu0 %v4541_v49 }
 0x10f   : > { %3909 = vmatmul.mubr.msk.f32.vlgmr.msra.gmra.mxu1 %vm456_vm2, %v455_v50  ;;  %3911 = vmatprep.subr.msk.mxu1 %vm463_vm3, %v4499_v37  ;;  %v1482_v50 = vunpack.c.l.bf16 %v3595_v48 }
 0x110   : > { %3977 = vmatprep.subr.mxu0 %v3575_v51  ;;  %3912 = vmatpush3.msk.msra.mxu1 %vm463_vm3, %v4499_v37 }
 0x111   : > { %3953 = vmatmul.mubr.msk.f32.vlgmr.msra.gmra.mxu0 %vm456_vm2, %v798_v52  ;;  %3913 = vmatprep.subr.mxu1 %v4501_v39 }
 0x112   : > { %3978 = vmatpush3.msra.mxu0 %v3575_v51  ;;  %3914 = vmatpush3.msra.mxu1 %v4501_v39  ;;  %v3607_v51 = vld [vmem:[%s5033_s4 + $0x38] sm:$0xff] }
 0x113   : > { %3982 = vmatprep.subr.msk.mxu0 %vm463_vm3, %v4499_v37  ;;  %3915 = vmatprep.subr.mxu1 %v4511_v41 }
 0x114   : > { %3916 = vmatpush3.msra.mxu1 %v4511_v41  ;;  %3925 = vmatprep.mubr.msk.f32.mxu1 %vm456_vm2, %v546_v54 }
 0x115   : > { %3917 = vmatprep.subr.mxu1 %v4517_v43 }
 0x116   : > { %3918 = vmatpush3.msra.mxu1 %v4517_v43 }
 0x117   : > { %3919 = vmatprep.subr.mxu1 %v4523_v45 }
 0x118   : > { %3920 = vmatpush3.msra.mxu1 %v4523_v45 }
 0x119   : > { %3921 = vmatprep.subr.mxu1 %v4532_v47 }
 0x11a   : > { %3922 = vmatpush3.msra.mxu1 %v4532_v47 }
 0x11b   : > { %3923 = vmatprep.subr.mxu1 %v4541_v49 }
 0x11c   : > { %3924 = vmatpush3.msra.mxu1 %v4541_v49 }
 0x11d   : > { %3926 = vmatmul.mubr.msk.f32.vlgmr.msra.gmra.mxu1 %vm456_vm2, %v547_v56  ;;  %3928 = vmatprep.subr.mxu1 %v3557_v57 }
 0x11e   : > { %3929 = vmatpush3.msra.mxu1 %v3557_v57  ;;  %v1652_v57 = vunpack.c.h.bf16 %v3594_v40 }
 0x11f   : > { %3933 = vmatprep.subr.mxu1 %v542_v58 }
 0x1cf   : > { %v3910_v59 = vpop.f32.mrf.mxu1 }
 0x1d1   : > { %v533_v60 = vpop.f32.mrf.mxu1  ;;  %v3954_v63 = vpop.f32.mrf.mxu0 }
 0x1d3   : > { %v871_v2 = vpop.f32.mrf.mxu0 }
 0x1dd   : > { %v3927_v61 = vpop.f32.mrf.mxu1 }
 0x1df   : > { %v620_v62 = vpop.f32.mrf.mxu1 }
 0x1e0   : > { %3930 = vmatprep.mubr.msk.f32.mxu1 %vm631_vm4, %v620_v62 }
 0x1e1   : > { %3931 = vmatmul.mubr.msk.f32.vlgmr.msra.gmra.mxu1 %vm631_vm4, %v3927_v61 }
 0x1e2   : > { %3934 = vmatpush3.msra.mxu1 %v542_v58  ;;  %3935 = vmatprep.mubr.msk.f32.mxu1 %vm631_vm4, %v533_v60 }
 0x1e3   : > { %3955 = vmatprep.subr.mxu1 %v3567_v0 }
 0x1e5   : > { %3936 = vmatmul.mubr.msk.f32.vlgmr.msra.gmra.mxu1 %vm631_vm4, %v3910_v59  ;;  %v3603_v59 = vld [vmem:[%s5030_s1 + $0x3c] sm:$0x1] }
 0x1e6   : > { %3956 = vmatpush3.msra.mxu1 %v3567_v0  ;;  %3957 = vmatprep.mubr.msk.f32.mxu1 %vm631_vm4, %v871_v2  ;;  %v1653_v60 = vunpack.c.l.bf16 %v3603_v59  ;;  %v3610_v2 = vld [vmem:[%s5030_s1 + $0x40] sm:$0xf]  ;;  %v3637_v59 = vld [vmem:[%s5034_s5 + $0x30] sm:$0xff] }
 0x1e7   : > { %3960 = vmatprep.subr.msk.mxu1 %vm463_vm3, %v4499_v37  ;;  %v1823_v4 = vunpack.c.l.bf16 %v3610_v2  ;;  %v3650_v2 = vld [vmem:[%s5034_s5 + $0x58] sm:$0xff] }
 0x1e9   : > { %3958 = vmatmul.mubr.msk.f32.vlgmr.msra.gmra.mxu1 %vm631_vm4, %v3954_v63 }
 0x1ea   : > { %3961 = vmatpush3.msk.msra.mxu1 %vm463_vm3, %v4499_v37  ;;  %3974 = vmatprep.mubr.msk.f32.mxu1 %vm456_vm2, %v968_v3 }
 0x1eb   : > { %3962 = vmatprep.subr.mxu1 %v4501_v39 }
 0x1ec   : > { %3963 = vmatpush3.msra.mxu1 %v4501_v39 }
 0x1ed   : > { %3964 = vmatprep.subr.mxu1 %v4511_v41 }
 0x1ee   : > { %3965 = vmatpush3.msra.mxu1 %v4511_v41 }
 0x1ef   : > { %3966 = vmatprep.subr.mxu1 %v4517_v43 }
 0x1f0   : > { %3967 = vmatpush3.msra.mxu1 %v4517_v43 }
 0x1f1   : > { %3968 = vmatprep.subr.mxu1 %v4523_v45 }
 0x1f2   : > { %3969 = vmatpush3.msra.mxu1 %v4523_v45 }
 0x1f3   : > { %3970 = vmatprep.subr.mxu1 %v4532_v47 }
 0x1f4   : > { %3971 = vmatpush3.msra.mxu1 %v4532_v47 }
 0x1f5   : > { %3972 = vmatprep.subr.mxu1 %v4541_v49 }
 0x1f6   : > { %3973 = vmatpush3.msra.mxu1 %v4541_v49 }
 0x1f7   : > { %3975 = vmatmul.mubr.msk.f32.vlgmr.msra.gmra.mxu1 %vm456_vm2, %v969_v5  ;;  %3999 = vmatprep.subr.mxu1 %v3583_v6 }
 0x1f8   : > { %4000 = vmatpush3.msra.mxu1 %v3583_v6  ;;  %v3611_v6 = vld [vmem:[%s5030_s1 + $0x44] sm:$0x1] }
 0x1f9   : > { %4004 = vmatprep.subr.msk.mxu1 %vm463_vm3, %v4499_v37 }
 0x2a1   : > { %v3932_v7 = vpop.f32.mrf.mxu1 }
 0x2a3   : > { %v704_v8 = vpop.f32.mrf.mxu1 }
 0x2a5   : > { %v3937_v9 = vpop.f32.mrf.mxu1 }
 0x2a6   : > { %v791_v10 = vadd.f32 %v3937_v9, %v3932_v7  ;;  %v3618_v9 = vld [vmem:[%s5036_s7 + $0x1] ss:$0 sm:$0xff] }
 0x2a7   : > { %v785_v11 = vpop.f32.mrf.mxu1 }
 0x2a8   : > { %v786_v12 = vadd.f32 %v785_v11, %v704_v8 }
 0x2a9   : > { %v3959_v13 = vpop.f32.mrf.mxu1 }
 0x2aa   : > { %v964_v14 = vadd.f32 %v3959_v13, %v791_v10 }
 0x2ab   : > { %v954_v15 = vpop.f32.mrf.mxu1 }
 0x2ac   : > { %v963_v16 = vadd.f32 %v954_v15, %v786_v12  ;;  %v2000_v15 = vld [vmem:[%s5031_s2] sm:$0x1] }
 0x2b7   : > { %v3976_v18 = vpop.f32.mrf.mxu1 }
 0x2b9   : > { %v1042_v20 = vpop.f32.mrf.mxu1 }
 0x2ba   : > { %3979 = vmatprep.mubr.msk.f32.mxu0 %vm631_vm4, %v1042_v20 }
 0x2bb   : > { %3980 = vmatmul.mubr.msk.f32.vlgmr.msra.gmra.mxu0 %vm631_vm4, %v3976_v18 }
 0x2bc   : > { %3983 = vmatpush3.msk.msra.mxu0 %vm463_vm3, %v4499_v37  ;;  %3996 = vmatprep.mubr.msk.f32.mxu0 %vm456_vm2, %v1139_v19  ;;  %v2001_v19 = vunpack.c.l.bf16 %v2000_v15  ;;  %v3382_v15 = vld [vmem:[%s5035_s6 + $0x8] sm:$0xff] }
 0x2bd   : > { %3984 = vmatprep.subr.mxu0 %v4501_v39 }
 0x2be   : > { %3985 = vmatpush3.msra.mxu0 %v4501_v39 }
 0x2bf   : > { %3986 = vmatprep.subr.mxu0 %v4511_v41 }
 0x2c0   : > { %3987 = vmatpush3.msra.mxu0 %v4511_v41 }
 0x2c1   : > { %3988 = vmatprep.subr.mxu0 %v4517_v43 }
 0x2c2   : > { %3989 = vmatpush3.msra.mxu0 %v4517_v43 }
 0x2c3   : > { %3990 = vmatprep.subr.mxu0 %v4523_v45 }
 0x2c4   : > { %3991 = vmatpush3.msra.mxu0 %v4523_v45 }
 0x2c5   : > { %3992 = vmatprep.subr.mxu0 %v4532_v47 }
 0x2c6   : > { %3993 = vmatpush3.msra.mxu0 %v4532_v47 }
 0x2c7   : > { %3994 = vmatprep.subr.mxu0 %v4541_v49 }
 0x2c8   : > { %3995 = vmatpush3.msra.mxu0 %v4541_v49 }
 0x2c9   : > { %3997 = vmatmul.mubr.msk.f32.vlgmr.msra.gmra.mxu0 %vm456_vm2, %v1140_v22  ;;  %4021 = vmatprep.subr.mxu0 %v3591_v23  ;;  %v2080_v22 = vld [vmem:[%s5034_s5 + $0x8] sm:$0xff] }
 0x2ca   : > { %4022 = vmatpush3.msra.mxu0 %v3591_v23  ;;  %v3624_v23 = vld [vmem:[%s5034_s5 + $0x10] sm:$0xff] }
 0x2cb   : > { %4026 = vmatprep.subr.msk.mxu0 %vm463_vm3, %v4499_v37 }
 0x37b   : > { %v3981_v24 = vpop.f32.mrf.mxu0 }
 0x37c   : > { %v1135_v25 = vadd.f32 %v3981_v24, %v964_v14  ;;  %v3621_v14 = vld [vmem:[%s5031_s2 + $0x1] sm:$0x1] }
 0x37d   : > { %v1125_v26 = vpop.f32.mrf.mxu0  ;;  %v2083_v18 = vunpack.c.l.bf16 %v3621_v14  ;;  %v2079_v24 = vld [vmem:[%s5034_s5] sm:$0xff]  ;;  %v3383_v14 = vld [vmem:[%s5035_s6 + $0x10] sm:$0xff] }
 0x37e   : > { %v1134_v27 = vadd.f32 %v1125_v26, %v963_v16 }
 0x389   : > { %v3998_v28 = vpop.f32.mrf.mxu0 }
 0x38b   : > { %v1213_v30 = vpop.f32.mrf.mxu0 }
 0x38c   : > { %4001 = vmatprep.mubr.msk.f32.mxu1 %vm631_vm4, %v1213_v30  ;;  %v3634_v30 = vld [vmem:[%s5031_s2 + $0x3] sm:$0x1] }
 0x38d   : > { %4002 = vmatmul.mubr.msk.f32.vlgmr.msra.gmra.mxu1 %vm631_vm4, %v3998_v28 }
 0x38e   : > { %4005 = vmatpush3.msk.msra.mxu1 %vm463_vm3, %v4499_v37  ;;  %4018 = vmatprep.mubr.msk.f32.mxu1 %vm456_vm2, %v1310_v29 }
 0x38f   : > { %4006 = vmatprep.subr.mxu1 %v4501_v39 }
 0x390   : > { %4007 = vmatpush3.msra.mxu1 %v4501_v39 }
 0x391   : > { %4008 = vmatprep.subr.mxu1 %v4511_v41 }
 0x392   : > { %4009 = vmatpush3.msra.mxu1 %v4511_v41 }
 0x393   : > { %4010 = vmatprep.subr.mxu1 %v4517_v43 }
 0x394   : > { %4011 = vmatpush3.msra.mxu1 %v4517_v43 }
 0x395   : > { %4012 = vmatprep.subr.mxu1 %v4523_v45 }
 0x396   : > { %4013 = vmatpush3.msra.mxu1 %v4523_v45 }
 0x397   : > { %4014 = vmatprep.subr.mxu1 %v4532_v47 }
 0x398   : > { %4015 = vmatpush3.msra.mxu1 %v4532_v47 }
 0x399   : > { %4016 = vmatprep.subr.mxu1 %v4541_v49 }
 0x39a   : > { %4017 = vmatpush3.msra.mxu1 %v4541_v49 }
 0x39b   : > { %4019 = vmatmul.mubr.msk.f32.vlgmr.msra.gmra.mxu1 %vm456_vm2, %v1311_v32  ;;  %4043 = vmatprep.subr.mxu1 %v3599_v33  ;;  %v2462_v32 = vunpack.c.l.bf16 %v3634_v30 }
 0x39c   : > { %4044 = vmatpush3.msra.mxu1 %v3599_v33  ;;  %v3640_v33 = vld [vmem:[%s5031_s2 + $0x4] sm:$0x1] }
 0x39d   : > { %4048 = vmatprep.subr.msk.mxu1 %vm463_vm3, %v4499_v37 }
 0x44d   : > { %v4003_v34 = vpop.f32.mrf.mxu1 }
 0x44e   : > { %v1306_v35 = vadd.f32 %v4003_v34, %v1135_v25  ;;  %v3628_v25 = vld [vmem:[%s5031_s2 + $0x2] sm:$0x1]  ;;  %v2615_v34 = vunpack.c.l.bf16 %v3640_v33 }
 0x44f   : > { %v1296_v36 = vpop.f32.mrf.mxu1  ;;  %v2309_v28 = vunpack.c.l.bf16 %v3628_v25 }
 0x450   : > { %v1305_v38 = vadd.f32 %v1296_v36, %v1134_v27 }
 0x45b   : > { %v4020_v42 = vpop.f32.mrf.mxu1 }
 0x45d   : > { %v1384_v46 = vpop.f32.mrf.mxu1 }
 0x45e   : > { %4023 = vmatprep.mubr.msk.f32.mxu0 %vm631_vm4, %v1384_v46  ;;  %v3664_v46 = vld [vmem:[%s5031_s2 + $0x8] sm:$0x1] }
 0x45f   : > { %4024 = vmatmul.mubr.msk.f32.vlgmr.msra.gmra.mxu0 %vm631_vm4, %v4020_v42  ;;  %v3658_v42 = vld [vmem:[%s5031_s2 + $0x7] sm:$0x1]  ;;  %v3227_v48 = vunpack.c.l.bf16 %v3664_v46 }
 0x460   : > { %4027 = vmatpush3.msk.msra.mxu0 %vm463_vm3, %v4499_v37  ;;  %4040 = vmatprep.mubr.msk.f32.mxu0 %vm456_vm2, %v1481_v44  ;;  %v3074_v44 = vunpack.c.l.bf16 %v3658_v42 }
 0x461   : > { %4028 = vmatprep.subr.mxu0 %v4501_v39 }
 0x462   : > { %4029 = vmatpush3.msra.mxu0 %v4501_v39 }
 0x463   : > { %4030 = vmatprep.subr.mxu0 %v4511_v41 }
 0x464   : > { %4031 = vmatpush3.msra.mxu0 %v4511_v41 }
 0x465   : > { %4032 = vmatprep.subr.mxu0 %v4517_v43 }
 0x466   : > { %4033 = vmatpush3.msra.mxu0 %v4517_v43 }
 0x467   : > { %4034 = vmatprep.subr.mxu0 %v4523_v45 }
 0x468   : > { %4035 = vmatpush3.msra.mxu0 %v4523_v45 }
 0x469   : > { %4036 = vmatprep.subr.mxu0 %v4532_v47 }
 0x46a   : > { %4037 = vmatpush3.msra.mxu0 %v4532_v47 }
 0x46b   : > { %4038 = vmatprep.subr.mxu0 %v4541_v49 }
 0x46c   : > { %4039 = vmatpush3.msra.mxu0 %v4541_v49 }
 0x46d   : > { %4041 = vmatmul.mubr.msk.f32.vlgmr.msra.gmra.mxu0 %vm456_vm2, %v1482_v50  ;;  %4065 = vmatprep.subr.mxu0 %v3607_v51  ;;  %v3632_v50 = vld [vmem:[%s5034_s5 + $0x28] sm:$0xff] }
 0x46e   : > { %4066 = vmatpush3.msra.mxu0 %v3607_v51  ;;  %v3631_v51 = vld [vmem:[%s5034_s5 + $0x20] sm:$0xff] }
 0x46f   : > { %4070 = vmatprep.subr.msk.mxu0 %vm463_vm3, %v4499_v37 }
 0x51f   : > { %v4025_v52 = vpop.f32.mrf.mxu0 }
 0x520   : > { %v1477_v53 = vadd.f32 %v4025_v52, %v1306_v35  ;;  %v3646_v35 = vld [vmem:[%s5031_s2 + $0x5] sm:$0x1] }
 0x521   : > { %v1467_v54 = vpop.f32.mrf.mxu0  ;;  %v2768_v36 = vunpack.c.l.bf16 %v3646_v35  ;;  %v3378_v35 = vld [vmem:[%s5036_s7 + $0x2] sm:$0x1] }
 0x522   : > { %v1476_v55 = vadd.f32 %v1467_v54, %v1305_v38  ;;  %v3652_v38 = vld [vmem:[%s5031_s2 + $0x6] sm:$0x1] }
 0x523   : > { %v2921_v40 = vunpack.c.l.bf16 %v3652_v38 }
 0x52d   : > { %v4042_v56 = vpop.f32.mrf.mxu0 }
 0x52f   : > { %v1555_v58 = vpop.f32.mrf.mxu0 }
 0x530   : > { %4045 = vmatprep.mubr.msk.f32.mxu1 %vm631_vm4, %v1555_v58 }
 0x531   : > { %4046 = vmatmul.mubr.msk.f32.vlgmr.msra.gmra.mxu1 %vm631_vm4, %v4042_v56 }
 0x532   : > { %4049 = vmatpush3.msk.msra.mxu1 %vm463_vm3, %v4499_v37  ;;  %4062 = vmatprep.mubr.msk.f32.mxu1 %vm456_vm2, %v1652_v57  ;;  %v3638_v57 = vld [vmem:[%s5034_s5 + $0x38] sm:$0xff] }
 0x533   : > { %4050 = vmatprep.subr.mxu1 %v4501_v39 }
 0x534   : > { %4051 = vmatpush3.msra.mxu1 %v4501_v39 }
 0x535   : > { %4052 = vmatprep.subr.mxu1 %v4511_v41 }
 0x536   : > { %4053 = vmatpush3.msra.mxu1 %v4511_v41 }
 0x537   : > { %4054 = vmatprep.subr.mxu1 %v4517_v43 }
 0x538   : > { %4055 = vmatpush3.msra.mxu1 %v4517_v43 }
 0x539   : > { %4056 = vmatprep.subr.mxu1 %v4523_v45 }
 0x53a   : > { %4057 = vmatpush3.msra.mxu1 %v4523_v45 }
 0x53b   : > { %4058 = vmatprep.subr.mxu1 %v4532_v47 }
 0x53c   : > { %4059 = vmatpush3.msra.mxu1 %v4532_v47 }
 0x53d   : > { %4060 = vmatprep.subr.mxu1 %v4541_v49 }
 0x53e   : > { %4061 = vmatpush3.msra.mxu1 %v4541_v49 }
 0x53f   : > { %4063 = vmatmul.mubr.msk.f32.vlgmr.msra.gmra.mxu1 %vm456_vm2, %v1653_v60 }
 0x5f1   : > { %v4047_v61 = vpop.f32.mrf.mxu1 }
 0x5f2   : > { %v1648_v62 = vadd.f32 %v4047_v61, %v1477_v53  ;;  %v3644_v61 = vld [vmem:[%s5034_s5 + $0x48] sm:$0xff] }
 0x5f3   : > { %v1638_v63 = vpop.f32.mrf.mxu1 }
 0x5f4   : > { %v1647_v0 = vadd.f32 %v1638_v63, %v1476_v55  ;;  %v3643_v63 = vld [vmem:[%s5034_s5 + $0x40] sm:$0xff] }
 0x5ff   : > { %v4064_v3 = vpop.f32.mrf.mxu1 }
 0x601   : > { %v1726_v5 = vpop.f32.mrf.mxu1 }
 0x602   : > { %4067 = vmatprep.mubr.msk.f32.mxu0 %vm631_vm4, %v1726_v5 }
 0x603   : > { %4068 = vmatmul.mubr.msk.f32.vlgmr.msra.gmra.mxu0 %vm631_vm4, %v4064_v3 }
 0x604   : > { %4071 = vmatpush3.msk.msra.mxu0 %vm463_vm3, %v4499_v37  ;;  %4084 = vmatprep.mubr.msk.f32.mxu0 %vm456_vm2, %v1823_v4  ;;  %v1824_v37 = vunpack.c.l.bf16 %v3611_v6  ;;  %v3649_v4 = vld [vmem:[%s5034_s5 + $0x50] sm:$0xff]  ;;  %v3656_v6 = vld [vmem:[%s5034_s5 + $0x68] sm:$0xff] }
 0x605   : > { %4072 = vmatprep.subr.mxu0 %v4501_v39 }
 0x606   : > { %4073 = vmatpush3.msra.mxu0 %v4501_v39  ;;  %v3615_v39 = vld [vmem:[%s5033_s4 + $0x40] sm:$0xff] }
 0x607   : > { %4074 = vmatprep.subr.mxu0 %v4511_v41  ;;  %4087 = vmatprep.subr.mxu1 %v3615_v39 }
 0x608   : > { %4075 = vmatpush3.msra.mxu0 %v4511_v41  ;;  %4088 = vmatpush3.msra.mxu1 %v3615_v39  ;;  %v3655_v39 = vld [vmem:[%s5034_s5 + $0x60] sm:$0xff] }
 0x609   : > { %4076 = vmatprep.subr.mxu0 %v4517_v43  ;;  %4092 = vmatprep.subr.mxu1 %v4337_v1 }
 0x60a   : > { %4077 = vmatpush3.msra.mxu0 %v4517_v43 }
 0x60b   : > { %4078 = vmatprep.subr.mxu0 %v4523_v45 }
 0x60c   : > { %4079 = vmatpush3.msra.mxu0 %v4523_v45 }
 0x60d   : > { %4080 = vmatprep.subr.mxu0 %v4532_v47 }
 0x60e   : > { %4081 = vmatpush3.msra.mxu0 %v4532_v47 }
 0x60f   : > { %4082 = vmatprep.subr.mxu0 %v4541_v49 }
 0x610   : > { %4083 = vmatpush3.msra.mxu0 %v4541_v49 }
 0x611   : > { %4085 = vmatmul.mubr.msk.f32.vlgmr.msra.gmra.mxu0 %vm456_vm2, %v1824_v37  ;;  %4099 = vmatprep.subr.mxu0 %v4337_v1 }
 0x612   : > { %4103 = vmatprep.mubr.msk.f32.mxu0 %vm4338_vm0, %v4337_v1 }
 0x6c3   : > { %v4069_v41 = vpop.f32.mrf.mxu0 }
 0x6c4   : > { %v1819_v43 = vadd.f32 %v4069_v41, %v1648_v62 }
 0x6c5   : > { %v1809_v45 = vpop.f32.mrf.mxu0 }
 0x6c6   : > { %v1818_v47 = vadd.f32 %v1809_v45, %v1647_v0 }
 0x6d1   : > { %v4086_v49 = vpop.f32.mrf.mxu0 }
 0x6d3   : > { %v1897_v7 = vpop.f32.mrf.mxu0 }
 0x6d4   : > { %4089 = vmatprep.mubr.msk.f32.mxu1 %vm631_vm4, %v1897_v7  ;;  %v3668_v7 = vld [vmem:[%s5034_s5 + $0x88] sm:$0xff] }
 0x6d5   : > { %4090 = vmatmul.mubr.msk.f32.vlgmr.msra.gmra.mxu1 %vm631_vm4, %v4086_v49 }
 0x6d6   : > { %4096 = vmatprep.mubr.msk.f32.mxu1 %vm4338_vm0, %v4337_v1 }
 0x795   : > { %v4091_v8 = vpop.f32.mrf.mxu1 }
 0x796   : > { %v1990_v10 = vadd.f32 %v4091_v8, %v1819_v43  ;;  %v3662_v43 = vld [vmem:[%s5034_s5 + $0x78] sm:$0xff] }
 0x797   : > { %v1980_v11 = vpop.f32.mrf.mxu1 }
 0x798   : > { %v1997_v12 = vadd.f32 %v3618_v9, %v1990_v10  ;;  %v1989_v13 = vadd.f32 %v1980_v11, %v1818_v47  ;;  %v3661_v47 = vld [vmem:[%s5034_s5 + $0x70] sm:$0xff] }
 0x79a   : > { %v4772_v16 = vmax.f32 %v1997_v12, 0.0  ;;  %v1996_v17 = vadd.f32 %v3618_v9, %v1989_v13  ;;  %v3667_v9 = vld [vmem:[%s5034_s5 + $0x80] sm:$0xff]  ;;  %v3384_v13 = vld [vmem:[%s5035_s6 + $0x18] sm:$0xff] }
 0x79c   : > { %v4774_v20 = vmax.f32 %v1996_v17, 0.0  ;;  %4093 = vmatpush3.msk.msra.mxu1 %vm463_vm3, %v4772_v16  ;;  %4100 = vmatpush3.msk.msra.mxu0 %vm463_vm3, %v4772_v16 }
 0x79d   : > { %4094 = vmatprep.subr.mxu1 %v4337_v1  ;;  %4101 = vmatprep.subr.mxu0 %v4337_v1 }
 0x79e   : > { %4095 = vmatpush3.msra.mxu1 %v4774_v20  ;;  %4102 = vmatpush3.msra.mxu0 %v4774_v20 }
 0x79f   : > { %4104 = vmatmul.mubr.msk.f32.vlgmr.msra.gmra.mxu0 %vm2002_vm5, %v2083_v18  ;;  %4097 = vmatmul.mubr.msk.f32.vlgmr.msra.gmra.mxu1 %vm2002_vm5, %v2001_v19 }
 0x7a0   : > { %4106 = vmatprep.subr.mxu1 %v4337_v1  ;;  %4113 = vmatprep.subr.mxu0 %v4337_v1 }
 0x7a1   : > { %4107 = vmatpush3.msra.mxu1 %v3625_v21  ;;  %4114 = vmatpush3.msra.mxu0 %v2080_v22 }
 0x7a2   : > { %4108 = vmatprep.subr.mxu1 %v4337_v1  ;;  %4110 = vmatprep.mubr.msk.f32.mxu1 %vm4338_vm0, %v4337_v1 }
 0x7a3   : > { %4109 = vmatpush3.msra.mxu1 %v3624_v23  ;;  %4115 = vmatprep.subr.mxu0 %v4337_v1 }
 0x7a4   : > { %4120 = vmatprep.subr.mxu1 %v4337_v1  ;;  %4117 = vmatprep.mubr.msk.f32.mxu0 %vm4338_vm0, %v4337_v1 }
 0x7a5   : > { %4116 = vmatpush3.msra.mxu0 %v2079_v24 }
 0x7a6   : > { %4127 = vmatprep.subr.mxu0 %v4337_v1 }
 0x85f   : > { %v2153_v26 = vpop.f32.mrf.mxu0  ;;  %v2075_v27 = vpop.f32.mrf.mxu1 }
 0x860   : > { %4111 = vmatmul.mubr.msk.f32.vlgmr.msra.gmra.mxu1 %vm2160_vm6, %v2153_v26  ;;  %4118 = vmatmul.mubr.msk.f32.vlgmr.msra.gmra.mxu0 %vm2160_vm6, %v2075_v27 }
 0x861   : > { %4121 = vmatpush3.msk.msra.mxu1 %vm463_vm3, %v4772_v16  ;;  %v4105_v29 = vpop.f32.mrf.mxu0  ;;  %4124 = vmatprep.mubr.msk.f32.mxu1 %vm4338_vm0, %v4337_v1  ;;  %v4098_v31 = vpop.f32.mrf.mxu1 }
 0x862   : > { %4122 = vmatprep.subr.mxu1 %v4337_v1  ;;  %4131 = vmatprep.mubr.msk.f32.mxu0 %vm4338_vm0, %v4337_v1 }
 0x863   : > { %4123 = vmatpush3.msra.mxu1 %v4774_v20  ;;  %4128 = vmatpush3.msra.mxu0 %v3632_v50 }
 0x864   : > { %4134 = vmatprep.subr.mxu1 %v4337_v1  ;;  %4125 = vmatmul.mubr.msk.f32.vlgmr.msra.gmra.mxu1 %vm2002_vm5, %v2309_v28 }
 0x865   : > { %4135 = vmatpush3.msk.msra.mxu1 %vm463_vm3, %v4772_v16  ;;  %4138 = vmatprep.mubr.msk.f32.mxu1 %vm4338_vm0, %v4337_v1 }
 0x866   : > { %4136 = vmatprep.subr.mxu1 %v4337_v1  ;;  %4129 = vmatprep.subr.mxu0 %v4337_v1 }
 0x867   : > { %4137 = vmatpush3.msra.mxu1 %v4774_v20  ;;  %4130 = vmatpush3.msra.mxu0 %v3631_v51 }
 0x868   : > { %4148 = vmatprep.subr.mxu1 %v4337_v1  ;;  %4139 = vmatmul.mubr.msk.f32.vlgmr.msra.gmra.mxu1 %vm2002_vm5, %v2462_v32 }
 0x869   : > { %4149 = vmatpush3.msk.msra.mxu1 %vm463_vm3, %v4772_v16  ;;  %4152 = vmatprep.mubr.msk.f32.mxu1 %vm4338_vm0, %v4337_v1 }
 0x86a   : > { %4150 = vmatprep.subr.mxu1 %v4337_v1  ;;  %4141 = vmatprep.subr.mxu0 %v4337_v1 }
 0x86b   : > { %4151 = vmatpush3.msra.mxu1 %v4774_v20 }
 0x86c   : > { %4162 = vmatprep.subr.mxu1 %v4337_v1  ;;  %4153 = vmatmul.mubr.msk.f32.vlgmr.msra.gmra.mxu1 %vm2002_vm5, %v2615_v34 }
 0x86d   : > { %4163 = vmatpush3.msk.msra.mxu1 %vm463_vm3, %v4772_v16  ;;  %4166 = vmatprep.mubr.msk.f32.mxu1 %vm4338_vm0, %v4337_v1 }
 0x86e   : > { %4164 = vmatprep.subr.mxu1 %v4337_v1 }
 0x86f   : > { %4165 = vmatpush3.msra.mxu1 %v4774_v20 }
 0x870   : > { %4176 = vmatprep.subr.mxu1 %v4337_v1  ;;  %4167 = vmatmul.mubr.msk.f32.vlgmr.msra.gmra.mxu1 %vm2002_vm5, %v2768_v36 }
 0x871   : > { %4177 = vmatpush3.msk.msra.mxu1 %vm463_vm3, %v4772_v16  ;;  %4180 = vmatprep.mubr.msk.f32.mxu1 %vm4338_vm0, %v4337_v1 }
 0x872   : > { %4178 = vmatprep.subr.mxu1 %v4337_v1 }
 0x873   : > { %4179 = vmatpush3.msra.mxu1 %v4774_v20 }
 0x874   : > { %4190 = vmatprep.subr.mxu1 %v4337_v1  ;;  %4181 = vmatmul.mubr.msk.f32.vlgmr.msra.gmra.mxu1 %vm2002_vm5, %v2921_v40 }
 0x875   : > { %4191 = vmatpush3.msk.msra.mxu1 %vm463_vm3, %v4772_v16  ;;  %4194 = vmatprep.mubr.msk.f32.mxu1 %vm4338_vm0, %v4337_v1 }
 0x876   : > { %4192 = vmatprep.subr.mxu1 %v4337_v1 }
 0x877   : > { %4193 = vmatpush3.msra.mxu1 %v4774_v20 }
 0x878   : > { %4204 = vmatprep.subr.mxu1 %v4337_v1  ;;  %4195 = vmatmul.mubr.msk.f32.vlgmr.msra.gmra.mxu1 %vm2002_vm5, %v3074_v44  ;;  %v3385_v44 = vld [vmem:[%s5036_s7 + $0x3] sm:$0x1] }
 0x879   : > { %4205 = vmatpush3.msk.msra.mxu1 %vm463_vm3, %v4772_v16  ;;  %4208 = vmatprep.mubr.msk.f32.mxu1 %vm4338_vm0, %v4337_v1  ;;  %v3381_v16 = vld [vmem:[%s5035_s6] sm:$0xff] }
 0x87a   : > { %4206 = vmatprep.subr.mxu1 %v4337_v1 }
 0x87b   : > { %4207 = vmatpush3.msra.mxu1 %v4774_v20 }
 0x87c   : > { %4209 = vmatmul.mubr.msk.f32.vlgmr.msra.gmra.mxu1 %vm2002_vm5, %v3227_v48  ;;  %4218 = vmatprep.subr.mxu1 %v4337_v1 }
 0x87d   : > { %4226 = vmatprep.mubr.msk.f32.mxu1 %vm4338_vm0, %v4337_v1  ;;  %4219 = vmatpush3.msra.mxu1 %v3384_v13 }
 0x87e   : > { %4220 = vmatprep.subr.mxu1 %v4337_v1 }
 0x87f   : > { %4221 = vmatpush3.msra.mxu1 %v3383_v14 }
 0x880   : > { %4222 = vmatprep.subr.mxu1 %v4337_v1 }
 0x881   : > { %4223 = vmatpush3.msra.mxu1 %v3382_v15 }
 0x882   : > { %4224 = vmatprep.subr.mxu1 %v4337_v1 }
 0x883   : > { %4225 = vmatpush3.msra.mxu1 %v3381_v16 }
 0x920   : > { %v2230_v52 = vpop.f32.mrf.mxu1  ;;  %v2303_v53 = vpop.f32.mrf.mxu0 }
 0x921   : > { %v4899_v54 = vadd.f32 %v2303_v53, %v2230_v52 }
 0x922   : > { %v4112_v55 = vpop.f32.mrf.mxu1  ;;  %v4119_v56 = vpop.f32.mrf.mxu0 }
 0x924   : > { %v2379_v58 = vpop.f32.mrf.mxu1 }
 0x925   : > { %4132 = vmatmul.mubr.msk.f32.vlgmr.msra.gmra.mxu0 %vm2160_vm6, %v2379_v58 }
 0x926   : > { %v4126_v60 = vpop.f32.mrf.mxu1  ;;  %4142 = vmatpush3.msra.mxu0 %v3638_v57  ;;  %4145 = vmatprep.mubr.msk.f32.mxu0 %vm4338_vm0, %v4337_v1 }
 0x927   : > { %4143 = vmatprep.subr.mxu0 %v4337_v1 }
 0x928   : > { %v2532_v62 = vpop.f32.mrf.mxu1  ;;  %4144 = vmatpush3.msra.mxu0 %v3637_v59 }
 0x929   : > { %4146 = vmatmul.mubr.msk.f32.vlgmr.msra.gmra.mxu0 %vm2160_vm6, %v2532_v62  ;;  %4155 = vmatprep.subr.mxu0 %v4337_v1 }
 0x92a   : > { %v4140_v0 = vpop.f32.mrf.mxu1  ;;  %4156 = vmatpush3.msra.mxu0 %v3644_v61  ;;  %4159 = vmatprep.mubr.msk.f32.mxu0 %vm4338_vm0, %v4337_v1 }
 0x92b   : > { %4157 = vmatprep.subr.mxu0 %v4337_v1 }
 0x92c   : > { %v2685_v3 = vpop.f32.mrf.mxu1  ;;  %4158 = vmatpush3.msra.mxu0 %v3643_v63 }
 0x92d   : > { %4160 = vmatmul.mubr.msk.f32.vlgmr.msra.gmra.mxu0 %vm2160_vm6, %v2685_v3  ;;  %4169 = vmatprep.subr.mxu0 %v4337_v1 }
 0x92e   : > { %v4154_v5 = vpop.f32.mrf.mxu1  ;;  %4170 = vmatpush3.msra.mxu0 %v3650_v2  ;;  %4173 = vmatprep.mubr.msk.f32.mxu0 %vm4338_vm0, %v4337_v1 }
 0x92f   : > { %4171 = vmatprep.subr.mxu0 %v4337_v1 }
 0x930   : > { %v2838_v37 = vpop.f32.mrf.mxu1  ;;  %4172 = vmatpush3.msra.mxu0 %v3649_v4 }
 0x931   : > { %4174 = vmatmul.mubr.msk.f32.vlgmr.msra.gmra.mxu0 %vm2160_vm6, %v2838_v37  ;;  %4183 = vmatprep.subr.mxu0 %v4337_v1 }
 0x932   : > { %v4168_v41 = vpop.f32.mrf.mxu1  ;;  %4184 = vmatpush3.msra.mxu0 %v3656_v6  ;;  %4187 = vmatprep.mubr.msk.f32.mxu0 %vm4338_vm0, %v4337_v1 }
 0x933   : > { %4185 = vmatprep.subr.mxu0 %v4337_v1 }
 0x934   : > { %v2991_v45 = vpop.f32.mrf.mxu1  ;;  %4186 = vmatpush3.msra.mxu0 %v3655_v39 }
 0x935   : > { %4188 = vmatmul.mubr.msk.f32.vlgmr.msra.gmra.mxu0 %vm2160_vm6, %v2991_v45  ;;  %4197 = vmatprep.subr.mxu0 %v4337_v1 }
 0x936   : > { %v4182_v49 = vpop.f32.mrf.mxu1  ;;  %4198 = vmatpush3.msra.mxu0 %v3662_v43  ;;  %4201 = vmatprep.mubr.msk.f32.mxu0 %vm4338_vm0, %v4337_v1 }
 0x937   : > { %4199 = vmatprep.subr.mxu0 %v4337_v1 }
 0x938   : > { %v3144_v8 = vpop.f32.mrf.mxu1  ;;  %4200 = vmatpush3.msra.mxu0 %v3661_v47 }
 0x939   : > { %4202 = vmatmul.mubr.msk.f32.vlgmr.msra.gmra.mxu0 %vm2160_vm6, %v3144_v8  ;;  %4211 = vmatprep.subr.mxu0 %v4337_v1 }
 0x93a   : > { %v4196_v10 = vpop.f32.mrf.mxu1  ;;  %4212 = vmatpush3.msra.mxu0 %v3668_v7  ;;  %4215 = vmatprep.mubr.msk.f32.mxu0 %vm4338_vm0, %v4337_v1 }
 0x93b   : > { %4213 = vmatprep.subr.mxu0 %v4337_v1 }
 0x93c   : > { %v3297_v11 = vpop.f32.mrf.mxu1  ;;  %4214 = vmatpush3.msra.mxu0 %v3667_v9 }
 0x93d   : > { %4216 = vmatmul.mubr.msk.f32.vlgmr.msra.gmra.mxu0 %vm2160_vm6, %v3297_v11 }
 0x93e   : > { %v4210_v12 = vpop.f32.mrf.mxu1 }
 0x9e5   : > { %v2455_v17 = vpop.f32.mrf.mxu0 }
 0x9e6   : > { %v2459_v24 = vadd.f32 %v2455_v17, %v4899_v54 }
 0x9e7   : > { %v4133_v18 = vpop.f32.mrf.mxu0 }
 0x9e9   : > { %v2608_v19 = vpop.f32.mrf.mxu0 }
 0x9ea   : > { %v2612_v26 = vadd.f32 %v2608_v19, %v2459_v24 }
 0x9eb   : > { %v4147_v20 = vpop.f32.mrf.mxu0 }
 0x9ed   : > { %v2761_v21 = vpop.f32.mrf.mxu0 }
 0x9ee   : > { %v2765_v28 = vadd.f32 %v2761_v21, %v2612_v26 }
 0x9ef   : > { %v4161_v22 = vpop.f32.mrf.mxu0 }
 0x9f1   : > { %v2914_v23 = vpop.f32.mrf.mxu0 }
 0x9f2   : > { %v2918_v30 = vadd.f32 %v2914_v23, %v2765_v28 }
 0x9f3   : > { %v4175_v25 = vpop.f32.mrf.mxu0 }
 0x9f5   : > { %v3067_v27 = vpop.f32.mrf.mxu0 }
 0x9f6   : > { %v3071_v32 = vadd.f32 %v3067_v27, %v2918_v30 }
 0x9f7   : > { %v4189_v29 = vpop.f32.mrf.mxu0 }
 0x9f9   : > { %v3220_v31 = vpop.f32.mrf.mxu0 }
 0x9fa   : > { %v3224_v1 = vadd.f32 %v3220_v31, %v3071_v32 }
 0x9fb   : > { %v4203_v33 = vpop.f32.mrf.mxu0 }
 0x9fd   : > { %v3373_v34 = vpop.f32.mrf.mxu0 }
 0x9fe   : > { %v3377_v36 = vadd.f32 %v3373_v34, %v3224_v1 }
 0x9ff   : > { %v4217_v38 = vpop.f32.mrf.mxu0 }
 0xa00   : > { %v3379_v40 = vadd.f32 %v3378_v35, %v3377_v36 }
 0xa02   : > { %v3380_v42 = vmax.f32 %v3379_v40, 0.0 }
 0xa04   : > { %4227 = vmatmul.mubr.msk.f32.vlgmr.msra.gmra.mxu1 %vm3386_vm7, %v3380_v42 }
 0xac4   : > { %v3456_v46 = vpop.f32.mrf.mxu1 }
 0xac5   : > { %v3457_v48 = vadd.f32 %v3456_v46, %v3385_v44 }
 0xac6   : > { %v4228_v50 = vpop.f32.mrf.mxu1 }
 0xac7   : > { %v3671_v51 = vmul.f32 -1.442695, %v3457_v48 }
 0xac9   : > { %4271 = vpow2.f32 %v3671_v51 }
 0xad6   : > { %v4272_v52 = vpop.eup %4271 }
 0xad7   : > { %v3463_v53 = vadd.f32 1.0, %v4272_v52 }
 0xad9   : > { %4273 = vrcp.f32 %v3463_v53 }
 0xae6   : > { %v4274_v54 = vpop.eup %4273 }
 0xae7   : > { %3467 = vst.msk [vmem:[%s297_s26] sm:$0x1] %vm3466_vm8, %v4274_v54 }
 0xae8   : > { %4288 = shalt.err (!%p4285_p3)
}
 0xae9   : > { %s4289_s22 = scalar_lea.hbm %s4994_s17, 16  ;;  %s4293_s25 = scalar_lea.hbm %s5037_s8, 32 }
 0xaea   : > { %p4290_p4 = scmp.ne.s32.totalorder %s4994_s17, %s4289_s22  ;;  %p4294_p9 = scmp.lt.s32.totalorder %s4994_s17, %s5037_s8 }
 0xaeb   : > { %p4295_p10 = scmp.lt.s32.totalorder %s4293_s25, %s4289_s22 }
 0xaec   : > { %p4291_p7 = pnand %p4290_p4, %p4423_p5 }
 0xaed   : > { %p4296_p11 = por %p4295_p10, %p4294_p9 }
 0xaee   : > { %p4292_p8 = pneg %p4291_p7 }
 0xaf0   : > { %p4297_p12 = pnand %p4296_p11, %p4292_p8 }
 0xaf2   : > { %4300 = shalt.err (!%p4297_p12)
}
 0xaf3   : > { %4230 = dma.vmem_to_hbm [thread:$0]  (%p4423_p5), %s3482_s10, 16, %s4994_s17, %s3469_s18  }
 0xaf4 PF: > { %p4236_p13 = scmp.ge.s32.totalorder %s4335_s30, 2  ;;  %s3493_s13 = sand.u32 1, %s4323_s27  }
 0xaf5   : > { %s3494_s19 = scalar_lea.sflag [#allocation3], %s3493_s13 }
 0xaf6   : > { %p4233_p0 = pnand %p4236_p13, %p4427_p6 }
 0xaf8   : > { %p4234_p1 = pneg %p4233_p0 }
 0xafa   : > { %4318 = dma.done.wait (%p4234_p1), %s3494_s19, 16  }
 0xafb   : > { %4320 = vsyncadd (%p4234_p1), %s3494_s19, 4294967280  ;;  %p18_p2 = scmp.ge.s32.totalorder %s4410_s11, 4   ;;  %s5040_s27 = smov %s4327_s28 }
 0xafc   : > { %s5041_s28 = smov %s4331_s29  ;;  %s5042_s29 = smov %s4421_s14 }
 0xafd   : > { %s5043_s30 = smov %s4410_s11  ;;  %20 = sbr.rel (!%p18_p2) target bundleno = 3 (0x3), region = 119 }
 0xb02   :  { %3498 = vsyncpa [#allocation3], 1 }
 0xb03   :  { %3500 = vsyncpa [#allocation3 + $0x1], 1 }

</bundles_post_ra>
